<compile_context>
chip_gen: v6e
topology: v6e:2x2x1
jax: 0.10.0
libtpu: 0.0.40
codegen_flags: <defaults>
</compile_context>

<pallas_src>
import functools

import jax
import jax.numpy as jnp
from jax.experimental import pallas as pl
from jax.experimental.pallas import tpu as pltpu

VMEM_SPEC = pl.BlockSpec(memory_space=pltpu.MemorySpace.VMEM)

NEG_INF = -1e30  # additive mask value for padded nodes (finite, exp() -> 0)


# ----------------------------------------------------------------------------
# Fused forward kernel: 3x GIN layer + gated attention + rho + classifier
# ----------------------------------------------------------------------------
def fused_forward_kernel(
    agg_ref, x_ref, mask_ref,
    c1w1_ref, c1b1_ref, c1w2_ref, c1b2_ref,
    c2w1_ref, c2b1_ref, c2w2_ref, c2b2_ref,
    c3w1_ref, c3b1_ref, c3w2_ref, c3b2_ref,
    wa_ref, ba_ref, wb_ref, bb_ref, wc_ref, bc_ref,
    wrho_ref, brho_ref, wcls_ref, bcls_ref,
    hz_ref,
):
    agg = agg_ref[...]                  # (Np, Np) bf16
    x = x_ref[...]                      # (Np, F)  bf16

    def gin_layer(h_bf16, w1_ref, b1_ref, w2_ref, b2_ref):
        # (1+eps)*x_i + sum_j x_j  as a single bf16 MXU matmul, f32 accum.
        a = jnp.dot(agg, h_bf16, preferred_element_type=jnp.float32)
        h = jnp.dot(a.astype(jnp.bfloat16), w1_ref[...],
                    preferred_element_type=jnp.float32) + b1_ref[...]
        h = jnp.maximum(h, 0.0)                              # MLP inner ReLU (f32)
        o = jnp.dot(h.astype(jnp.bfloat16), w2_ref[...],
                    preferred_element_type=jnp.float32) + b2_ref[...]
        return jnp.maximum(o, 0.0)                           # fused F.relu(conv(x))

    x1 = gin_layer(x, c1w1_ref, c1b1_ref, c1w2_ref, c1b2_ref)
    x2 = gin_layer(x1.astype(jnp.bfloat16), c2w1_ref, c2b1_ref, c2w2_ref, c2b2_ref)
    x3 = gin_layer(x2.astype(jnp.bfloat16), c3w1_ref, c3b1_ref, c3w2_ref, c3b2_ref)

    # --- Attn_Net_Gated (eval mode, n_classes=1) --------------------------------
    x3b = x3.astype(jnp.bfloat16)
    a = jnp.tanh(jnp.dot(x3b, wa_ref[...],
                         preferred_element_type=jnp.float32) + ba_ref[...])
    b = jax.nn.sigmoid(jnp.dot(x3b, wb_ref[...],
                               preferred_element_type=jnp.float32) + bb_ref[...])
    ab = a * b                                               # (Np, H) f32

    # Lane-dense attention scores: (1, Np) = wc_row @ ab.T (MXU), + bias + mask.
    scores = jnp.dot(wc_ref[...], ab.T,
                     preferred_element_type=jnp.float32)     # (1, Np)
    scores = scores + bc_ref[...] + mask_ref[...]

    # Softmax over the node (lane) axis.
    m = jnp.max(scores, axis=-1, keepdims=True)
    e = jnp.exp(scores - m)
    p = e * pl.reciprocal(jnp.sum(e, axis=-1, keepdims=True), approx=False)

    # Attention pooling as a (1,Np)@(Np,H) MXU matmul.
    h = jnp.dot(p, x3, preferred_element_type=jnp.float32)   # (1, H)

    # path_rho: Linear + ReLU
    h = jnp.maximum(
        jnp.dot(h.astype(jnp.bfloat16), wrho_ref[...],
                preferred_element_type=jnp.float32) + brho_ref[...],
        0.0)
    # classifier + sigmoid hazards
    logits = jnp.dot(h.astype(jnp.bfloat16), wcls_ref[...],
                     preferred_element_type=jnp.float32) + bcls_ref[...]
    hz_ref[...] = jax.nn.sigmoid(logits)                     # (1, C)


# ----------------------------------------------------------------------------
# Host-side helpers
# ----------------------------------------------------------------------------
def _round_up(n, m):
    return ((n + m - 1) // m) * m


def init_params(key, num_features, hidden_dim, n_classes):
    """Weight matrices stored in bf16 (MXU operands), biases / tiny vecs in f32."""
    def lin(k, fan_in, fan_out, w_dtype=jnp.bfloat16):
        kw, kb = jax.random.split(k)
        w = (jax.random.normal(kw, (fan_in, fan_out), jnp.float32) * 0.05)
        b = (jax.random.normal(kb, (1, fan_out), jnp.float32) * 0.05)
        return w.astype(w_dtype), b

    ks = jax.random.split(key, 12)
    p = {}
    # GINConv MLPs:  Seq(Linear(in, H), ReLU, Linear(H, H))
    p["c1_w1"], p["c1_b1"] = lin(ks[0], num_features, hidden_dim)
    p["c1_w2"], p["c1_b2"] = lin(ks[1], hidden_dim, hidden_dim)
    p["c2_w1"], p["c2_b1"] = lin(ks[2], hidden_dim, hidden_dim)
    p["c2_w2"], p["c2_b2"] = lin(ks[3], hidden_dim, hidden_dim)
    p["c3_w1"], p["c3_b1"] = lin(ks[4], hidden_dim, hidden_dim)
    p["c3_w2"], p["c3_b2"] = lin(ks[5], hidden_dim, hidden_dim)
    # Attn_Net_Gated(L=H, D=H, n_classes=1)
    p["wa"], p["ba"] = lin(ks[6], hidden_dim, hidden_dim)
    p["wb"], p["bb"] = lin(ks[7], hidden_dim, hidden_dim)
    wc, bc = lin(ks[8], hidden_dim, 1, w_dtype=jnp.float32)  # attention_c: Linear(H,1)
    p["wc"] = wc.T                                           # (1, H) row vector, f32
    p["bc"] = bc                                             # (1, 1) f32
    # path_rho: Linear(H, H) + ReLU
    p["wrho"], p["brho"] = lin(ks[9], hidden_dim, hidden_dim)
    # classifier: Linear(H, n_classes)
    p["wcls"], p["bcls"] = lin(ks[10], hidden_dim, n_classes)
    return p


def build_agg_matrix(edge_index, num_nodes, num_nodes_padded, eps=0.0):
    """Dense padded GIN aggregation matrix: (1+eps)*I + A, A[i,j] = #edges j->i."""
    src, dst = edge_index[0], edge_index[1]
    adj = jnp.zeros((num_nodes_padded, num_nodes_padded), jnp.float32)
    adj = adj.at[dst, src].add(1.0)
    diag = (jnp.arange(num_nodes_padded) < num_nodes).astype(jnp.float32) * (1.0 + eps)
    return (adj + jnp.diag(diag)).astype(jnp.bfloat16)


@functools.partial(jax.jit, static_argnames=("num_nodes",))
def deep_graph_conv_surv_forward(params, x, edge_index, num_nodes):
    # Pad node count to the lane width so the attention row / MXU tiles are dense.
    n_pad = _round_up(max(num_nodes, 8), 128)
    agg = build_agg_matrix(edge_index, num_nodes, n_pad)
    x_p = jnp.zeros((n_pad, x.shape[1]), jnp.bfloat16)
    x_p = x_p.at[:num_nodes].set(x.astype(jnp.bfloat16))
    mask = jnp.where(jnp.arange(n_pad)[None, :] < num_nodes,
                     0.0, NEG_INF).astype(jnp.float32)        # (1, n_pad)

    n_classes = params["wcls"].shape[1]
    hazards = pl.pallas_call(
        fused_forward_kernel,
        out_shape=jax.ShapeDtypeStruct((1, n_classes), jnp.float32),
        in_specs=[VMEM_SPEC] * 25,
        out_specs=VMEM_SPEC,
        compiler_params=pltpu.CompilerParams(vmem_limit_bytes=32 * 1024 * 1024),
    )(agg, x_p, mask,
      params["c1_w1"], params["c1_b1"], params["c1_w2"], params["c1_b2"],
      params["c2_w1"], params["c2_b1"], params["c2_w2"], params["c2_b2"],
      params["c3_w1"], params["c3_b1"], params["c3_w2"], params["c3_b2"],
      params["wa"], params["ba"], params["wb"], params["bb"],
      params["wc"], params["bc"],
      params["wrho"], params["brho"], params["wcls"], params["bcls"])
    return hazards                                            # (1, n_classes)


if __name__ == "__main__":
    NUM_NODES = 16
    NUM_FEATURES = 256
    HIDDEN_DIM = 128
    N_CLASSES = 4

    key = jax.random.PRNGKey(0)
    k_x, k_e, k_p = jax.random.split(key, 3)

    # Node feature matrix data.x : (N, num_features)
    x = jax.random.normal(k_x, (NUM_NODES, NUM_FEATURES), jnp.float32)

    # data.edge_index : (2, E) — deterministic ring + random extra edges
    ring_src = jnp.arange(NUM_NODES, dtype=jnp.int32)
    ring_dst = (ring_src + 1) % NUM_NODES
    extra = jax.random.randint(k_e, (2, NUM_NODES), 0, NUM_NODES, dtype=jnp.int32)
    edge_index = jnp.concatenate(
        [jnp.stack([ring_src, ring_dst]), extra], axis=1)     # (2, 32)

    params = init_params(k_p, NUM_FEATURES, HIDDEN_DIM, N_CLASSES)

    hazards = deep_graph_conv_surv_forward(params, x, edge_index, NUM_NODES)
    hazards = jax.block_until_ready(hazards)

    assert hazards.shape == (1, N_CLASSES)
    assert bool(jnp.all(jnp.isfinite(hazards)))
    assert bool(jnp.all((hazards >= 0.0) & (hazards <= 1.0)))
    print("KERNEL_OK")
</pallas_src>

<mosaic_0001>
module attributes {stable_mosaic.version = 11 : i64} {
  func.func private @main(%arg0: i32) attributes {dimension_semantics = [#tpu.dimension_semantics<core_parallel>], iteration_bounds = array<i64: 2>, tpu.core_type = #tpu.core_type<sc_scalar_subcore>, window_params = []} {
    return
  }
}

module attributes {stable_mosaic.version = 11 : i64} {
  func.func private @main(%arg0: i32) attributes {dimension_semantics = [#tpu.dimension_semantics<core_parallel>], iteration_bounds = array<i64: 2>, tpu.core_type = #tpu.core_type<sc_scalar_subcore>, window_params = []} {
    return
  }
}

module attributes {stable_mosaic.version = 11 : i64} {
  func.func @fused_forward_kernel(%arg0: memref<128x128xbf16, #tpu.memory_space<vmem>>, %arg1: memref<128x256xbf16, #tpu.memory_space<vmem>>, %arg2: memref<1x128xf32, #tpu.memory_space<vmem>>, %arg3: memref<256x128xbf16, #tpu.memory_space<vmem>>, %arg4: memref<1x128xf32, #tpu.memory_space<vmem>>, %arg5: memref<128x128xbf16, #tpu.memory_space<vmem>>, %arg6: memref<1x128xf32, #tpu.memory_space<vmem>>, %arg7: memref<128x128xbf16, #tpu.memory_space<vmem>>, %arg8: memref<1x128xf32, #tpu.memory_space<vmem>>, %arg9: memref<128x128xbf16, #tpu.memory_space<vmem>>, %arg10: memref<1x128xf32, #tpu.memory_space<vmem>>, %arg11: memref<128x128xbf16, #tpu.memory_space<vmem>>, %arg12: memref<1x128xf32, #tpu.memory_space<vmem>>, %arg13: memref<128x128xbf16, #tpu.memory_space<vmem>>, %arg14: memref<1x128xf32, #tpu.memory_space<vmem>>, %arg15: memref<128x128xbf16, #tpu.memory_space<vmem>>, %arg16: memref<1x128xf32, #tpu.memory_space<vmem>>, %arg17: memref<128x128xbf16, #tpu.memory_space<vmem>>, %arg18: memref<1x128xf32, #tpu.memory_space<vmem>>, %arg19: memref<1x128xf32, #tpu.memory_space<vmem>>, %arg20: memref<1x1xf32, #tpu.memory_space<vmem>>, %arg21: memref<128x128xbf16, #tpu.memory_space<vmem>>, %arg22: memref<1x128xf32, #tpu.memory_space<vmem>>, %arg23: memref<128x4xbf16, #tpu.memory_space<vmem>>, %arg24: memref<1x4xf32, #tpu.memory_space<vmem>>, %arg25: memref<1x4xf32, #tpu.memory_space<vmem>>) attributes {dimension_semantics = [], scalar_prefetch = 0 : i64, scratch_operands = 0 : i64, tpu.core_type = #tpu.core_type<tc>} {
    %c0 = arith.constant 0 : index
    %c0_0 = arith.constant 0 : index
    %0 = vector.load %arg0[%c0, %c0_0] : memref<128x128xbf16, #tpu.memory_space<vmem>>, vector<128x128xbf16>
    %c0_1 = arith.constant 0 : index
    %c0_2 = arith.constant 0 : index
    %1 = vector.load %arg1[%c0_1, %c0_2] : memref<128x256xbf16, #tpu.memory_space<vmem>>, vector<128x256xbf16>
    %cst = arith.constant dense<0.000000e+00> : vector<128x256xf32>
    %2 = tpu.matmul %0, %1, %cst {dimension_numbers = #tpu.dot_dimension_numbers<[1], [0], [0], [1], [0, 0, 1, 1], [], []>} : vector<128x128xbf16>, vector<128x256xbf16>, vector<128x256xf32> -> vector<128x256xf32>
    %3 = arith.truncf %2 : vector<128x256xf32> to vector<128x256xbf16>
    %c0_3 = arith.constant 0 : index
    %c0_4 = arith.constant 0 : index
    %4 = vector.load %arg3[%c0_3, %c0_4] : memref<256x128xbf16, #tpu.memory_space<vmem>>, vector<256x128xbf16>
    %cst_5 = arith.constant dense<0.000000e+00> : vector<128x128xf32>
    %5 = tpu.matmul %3, %4, %cst_5 {dimension_numbers = #tpu.dot_dimension_numbers<[1], [0], [0], [1], [0, 0, 1, 1], [], []>} : vector<128x256xbf16>, vector<256x128xbf16>, vector<128x128xf32> -> vector<128x128xf32>
    %c0_6 = arith.constant 0 : index
    %c0_7 = arith.constant 0 : index
    %6 = vector.load %arg4[%c0_6, %c0_7] : memref<1x128xf32, #tpu.memory_space<vmem>>, vector<1x128xf32>
    %7 = vector.broadcast %6 : vector<1x128xf32> to vector<128x128xf32>
    %8 = arith.addf %5, %7 : vector<128x128xf32>
    %cst_8 = arith.constant 0.000000e+00 : f32
    %9 = vector.broadcast %cst_8 : f32 to vector<128x128xf32>
    %10 = arith.maximumf %8, %9 : vector<128x128xf32>
    %11 = arith.truncf %10 : vector<128x128xf32> to vector<128x128xbf16>
    %c0_9 = arith.constant 0 : index
    %c0_10 = arith.constant 0 : index
    %12 = vector.load %arg5[%c0_9, %c0_10] : memref<128x128xbf16, #tpu.memory_space<vmem>>, vector<128x128xbf16>
    %cst_11 = arith.constant dense<0.000000e+00> : vector<128x128xf32>
    %13 = tpu.matmul %11, %12, %cst_11 {dimension_numbers = #tpu.dot_dimension_numbers<[1], [0], [0], [1], [0, 0, 1, 1], [], []>} : vector<128x128xbf16>, vector<128x128xbf16>, vector<128x128xf32> -> vector<128x128xf32>
    %c0_12 = arith.constant 0 : index
    %c0_13 = arith.constant 0 : index
    %14 = vector.load %arg6[%c0_12, %c0_13] : memref<1x128xf32, #tpu.memory_space<vmem>>, vector<1x128xf32>
    %15 = vector.broadcast %14 : vector<1x128xf32> to vector<128x128xf32>
    %16 = arith.addf %13, %15 : vector<128x128xf32>
    %cst_14 = arith.constant 0.000000e+00 : f32
    %17 = vector.broadcast %cst_14 : f32 to vector<128x128xf32>
    %18 = arith.maximumf %16, %17 : vector<128x128xf32>
    %19 = arith.truncf %18 : vector<128x128xf32> to vector<128x128xbf16>
    %cst_15 = arith.constant dense<0.000000e+00> : vector<128x128xf32>
    %20 = tpu.matmul %0, %19, %cst_15 {dimension_numbers = #tpu.dot_dimension_numbers<[1], [0], [0], [1], [0, 0, 1, 1], [], []>} : vector<128x128xbf16>, vector<128x128xbf16>, vector<128x128xf32> -> vector<128x128xf32>
    %21 = arith.truncf %20 : vector<128x128xf32> to vector<128x128xbf16>
    %c0_16 = arith.constant 0 : index
    %c0_17 = arith.constant 0 : index
    %22 = vector.load %arg7[%c0_16, %c0_17] : memref<128x128xbf16, #tpu.memory_space<vmem>>, vector<128x128xbf16>
    %cst_18 = arith.constant dense<0.000000e+00> : vector<128x128xf32>
    %23 = tpu.matmul %21, %22, %cst_18 {dimension_numbers = #tpu.dot_dimension_numbers<[1], [0], [0], [1], [0, 0, 1, 1], [], []>} : vector<128x128xbf16>, vector<128x128xbf16>, vector<128x128xf32> -> vector<128x128xf32>
    %c0_19 = arith.constant 0 : index
    %c0_20 = arith.constant 0 : index
    %24 = vector.load %arg8[%c0_19, %c0_20] : memref<1x128xf32, #tpu.memory_space<vmem>>, vector<1x128xf32>
    %25 = vector.broadcast %24 : vector<1x128xf32> to vector<128x128xf32>
    %26 = arith.addf %23, %25 : vector<128x128xf32>
    %cst_21 = arith.constant 0.000000e+00 : f32
    %27 = vector.broadcast %cst_21 : f32 to vector<128x128xf32>
    %28 = arith.maximumf %26, %27 : vector<128x128xf32>
    %29 = arith.truncf %28 : vector<128x128xf32> to vector<128x128xbf16>
    %c0_22 = arith.constant 0 : index
    %c0_23 = arith.constant 0 : index
    %30 = vector.load %arg9[%c0_22, %c0_23] : memref<128x128xbf16, #tpu.memory_space<vmem>>, vector<128x128xbf16>
    %cst_24 = arith.constant dense<0.000000e+00> : vector<128x128xf32>
    %31 = tpu.matmul %29, %30, %cst_24 {dimension_numbers = #tpu.dot_dimension_numbers<[1], [0], [0], [1], [0, 0, 1, 1], [], []>} : vector<128x128xbf16>, vector<128x128xbf16>, vector<128x128xf32> -> vector<128x128xf32>
    %c0_25 = arith.constant 0 : index
    %c0_26 = arith.constant 0 : index
    %32 = vector.load %arg10[%c0_25, %c0_26] : memref<1x128xf32, #tpu.memory_space<vmem>>, vector<1x128xf32>
    %33 = vector.broadcast %32 : vector<1x128xf32> to vector<128x128xf32>
    %34 = arith.addf %31, %33 : vector<128x128xf32>
    %cst_27 = arith.constant 0.000000e+00 : f32
    %35 = vector.broadcast %cst_27 : f32 to vector<128x128xf32>
    %36 = arith.maximumf %34, %35 : vector<128x128xf32>
    %37 = arith.truncf %36 : vector<128x128xf32> to vector<128x128xbf16>
    %cst_28 = arith.constant dense<0.000000e+00> : vector<128x128xf32>
    %38 = tpu.matmul %0, %37, %cst_28 {dimension_numbers = #tpu.dot_dimension_numbers<[1], [0], [0], [1], [0, 0, 1, 1], [], []>} : vector<128x128xbf16>, vector<128x128xbf16>, vector<128x128xf32> -> vector<128x128xf32>
    %39 = arith.truncf %38 : vector<128x128xf32> to vector<128x128xbf16>
    %c0_29 = arith.constant 0 : index
    %c0_30 = arith.constant 0 : index
    %40 = vector.load %arg11[%c0_29, %c0_30] : memref<128x128xbf16, #tpu.memory_space<vmem>>, vector<128x128xbf16>
    %cst_31 = arith.constant dense<0.000000e+00> : vector<128x128xf32>
    %41 = tpu.matmul %39, %40, %cst_31 {dimension_numbers = #tpu.dot_dimension_numbers<[1], [0], [0], [1], [0, 0, 1, 1], [], []>} : vector<128x128xbf16>, vector<128x128xbf16>, vector<128x128xf32> -> vector<128x128xf32>
    %c0_32 = arith.constant 0 : index
    %c0_33 = arith.constant 0 : index
    %42 = vector.load %arg12[%c0_32, %c0_33] : memref<1x128xf32, #tpu.memory_space<vmem>>, vector<1x128xf32>
    %43 = vector.broadcast %42 : vector<1x128xf32> to vector<128x128xf32>
    %44 = arith.addf %41, %43 : vector<128x128xf32>
    %cst_34 = arith.constant 0.000000e+00 : f32
    %45 = vector.broadcast %cst_34 : f32 to vector<128x128xf32>
    %46 = arith.maximumf %44, %45 : vector<128x128xf32>
    %47 = arith.truncf %46 : vector<128x128xf32> to vector<128x128xbf16>
    %c0_35 = arith.constant 0 : index
    %c0_36 = arith.constant 0 : index
    %48 = vector.load %arg13[%c0_35, %c0_36] : memref<128x128xbf16, #tpu.memory_space<vmem>>, vector<128x128xbf16>
    %cst_37 = arith.constant dense<0.000000e+00> : vector<128x128xf32>
    %49 = tpu.matmul %47, %48, %cst_37 {dimension_numbers = #tpu.dot_dimension_numbers<[1], [0], [0], [1], [0, 0, 1, 1], [], []>} : vector<128x128xbf16>, vector<128x128xbf16>, vector<128x128xf32> -> vector<128x128xf32>
    %c0_38 = arith.constant 0 : index
    %c0_39 = arith.constant 0 : index
    %50 = vector.load %arg14[%c0_38, %c0_39] : memref<1x128xf32, #tpu.memory_space<vmem>>, vector<1x128xf32>
    %51 = vector.broadcast %50 : vector<1x128xf32> to vector<128x128xf32>
    %52 = arith.addf %49, %51 : vector<128x128xf32>
    %cst_40 = arith.constant 0.000000e+00 : f32
    %53 = vector.broadcast %cst_40 : f32 to vector<128x128xf32>
    %54 = arith.maximumf %52, %53 : vector<128x128xf32>
    %55 = arith.truncf %54 : vector<128x128xf32> to vector<128x128xbf16>
    %c0_41 = arith.constant 0 : index
    %c0_42 = arith.constant 0 : index
    %56 = vector.load %arg15[%c0_41, %c0_42] : memref<128x128xbf16, #tpu.memory_space<vmem>>, vector<128x128xbf16>
    %cst_43 = arith.constant dense<0.000000e+00> : vector<128x128xf32>
    %57 = tpu.matmul %55, %56, %cst_43 {dimension_numbers = #tpu.dot_dimension_numbers<[1], [0], [0], [1], [0, 0, 1, 1], [], []>} : vector<128x128xbf16>, vector<128x128xbf16>, vector<128x128xf32> -> vector<128x128xf32>
    %c0_44 = arith.constant 0 : index
    %c0_45 = arith.constant 0 : index
    %58 = vector.load %arg16[%c0_44, %c0_45] : memref<1x128xf32, #tpu.memory_space<vmem>>, vector<1x128xf32>
    %59 = vector.broadcast %58 : vector<1x128xf32> to vector<128x128xf32>
    %60 = arith.addf %57, %59 : vector<128x128xf32>
    %61 = math.tanh %60 : vector<128x128xf32>
    %c0_46 = arith.constant 0 : index
    %c0_47 = arith.constant 0 : index
    %62 = vector.load %arg17[%c0_46, %c0_47] : memref<128x128xbf16, #tpu.memory_space<vmem>>, vector<128x128xbf16>
    %cst_48 = arith.constant dense<0.000000e+00> : vector<128x128xf32>
    %63 = tpu.matmul %55, %62, %cst_48 {dimension_numbers = #tpu.dot_dimension_numbers<[1], [0], [0], [1], [0, 0, 1, 1], [], []>} : vector<128x128xbf16>, vector<128x128xbf16>, vector<128x128xf32> -> vector<128x128xf32>
    %c0_49 = arith.constant 0 : index
    %c0_50 = arith.constant 0 : index
    %64 = vector.load %arg18[%c0_49, %c0_50] : memref<1x128xf32, #tpu.memory_space<vmem>>, vector<1x128xf32>
    %65 = vector.broadcast %64 : vector<1x128xf32> to vector<128x128xf32>
    %66 = arith.addf %63, %65 : vector<128x128xf32>
    %67 = arith.negf %66 : vector<128x128xf32>
    %68 = math.exp %67 : vector<128x128xf32>
    %cst_51 = arith.constant 1.000000e+00 : f32
    %69 = vector.broadcast %cst_51 : f32 to vector<128x128xf32>
    %70 = arith.addf %69, %68 : vector<128x128xf32>
    %71 = arith.divf %69, %70 : vector<128x128xf32>
    %72 = arith.mulf %61, %71 : vector<128x128xf32>
    %c0_52 = arith.constant 0 : index
    %c0_53 = arith.constant 0 : index
    %73 = vector.load %arg19[%c0_52, %c0_53] : memref<1x128xf32, #tpu.memory_space<vmem>>, vector<1x128xf32>
    %74 = tpu.transpose %72, [1, 0] : vector<128x128xf32> -> vector<128x128xf32>
    %cst_54 = arith.constant dense<0.000000e+00> : vector<1x128xf32>
    %75 = tpu.matmul %73, %74, %cst_54 {dimension_numbers = #tpu.dot_dimension_numbers<[1], [0], [0], [1], [0, 0, 1, 1], [], []>} : vector<1x128xf32>, vector<128x128xf32>, vector<1x128xf32> -> vector<1x128xf32>
    %c0_55 = arith.constant 0 : index
    %c0_56 = arith.constant 0 : index
    %76 = vector.load %arg20[%c0_55, %c0_56] : memref<1x1xf32, #tpu.memory_space<vmem>>, vector<1x1xf32>
    %77 = vector.broadcast %76 : vector<1x1xf32> to vector<1x128xf32>
    %78 = arith.addf %75, %77 : vector<1x128xf32>
    %c0_57 = arith.constant 0 : index
    %c0_58 = arith.constant 0 : index
    %79 = vector.load %arg2[%c0_57, %c0_58] : memref<1x128xf32, #tpu.memory_space<vmem>>, vector<1x128xf32>
    %80 = arith.addf %78, %79 : vector<1x128xf32>
    %cst_59 = arith.constant dense<0xFF800000> : vector<1xf32>
    %81 = vector.multi_reduction <maximumf>, %80, %cst_59 [1] : vector<1x128xf32> to vector<1xf32>
    %82 = vector.shape_cast %81 : vector<1xf32> to vector<1x1xf32>
    %83 = vector.broadcast %82 : vector<1x1xf32> to vector<1x128xf32>
    %84 = arith.subf %80, %83 : vector<1x128xf32>
    %85 = math.exp %84 : vector<1x128xf32>
    %cst_60 = arith.constant dense<0.000000e+00> : vector<1xf32>
    %86 = vector.multi_reduction <add>, %85, %cst_60 [1] : vector<1x128xf32> to vector<1xf32>
    %87 = vector.shape_cast %86 : vector<1xf32> to vector<1x1xf32>
    %88 = tpu.reciprocal %87 : vector<1x1xf32> -> vector<1x1xf32>
    %89 = vector.broadcast %88 : vector<1x1xf32> to vector<1x128xf32>
    %90 = arith.mulf %85, %89 : vector<1x128xf32>
    %cst_61 = arith.constant dense<0.000000e+00> : vector<1x128xf32>
    %91 = tpu.matmul %90, %54, %cst_61 {dimension_numbers = #tpu.dot_dimension_numbers<[1], [0], [0], [1], [0, 0, 1, 1], [], []>} : vector<1x128xf32>, vector<128x128xf32>, vector<1x128xf32> -> vector<1x128xf32>
    %92 = arith.truncf %91 : vector<1x128xf32> to vector<1x128xbf16>
    %c0_62 = arith.constant 0 : index
    %c0_63 = arith.constant 0 : index
    %93 = vector.load %arg21[%c0_62, %c0_63] : memref<128x128xbf16, #tpu.memory_space<vmem>>, vector<128x128xbf16>
    %cst_64 = arith.constant dense<0.000000e+00> : vector<1x128xf32>
    %94 = tpu.matmul %92, %93, %cst_64 {dimension_numbers = #tpu.dot_dimension_numbers<[1], [0], [0], [1], [0, 0, 1, 1], [], []>} : vector<1x128xbf16>, vector<128x128xbf16>, vector<1x128xf32> -> vector<1x128xf32>
    %c0_65 = arith.constant 0 : index
    %c0_66 = arith.constant 0 : index
    %95 = vector.load %arg22[%c0_65, %c0_66] : memref<1x128xf32, #tpu.memory_space<vmem>>, vector<1x128xf32>
    %96 = arith.addf %94, %95 : vector<1x128xf32>
    %cst_67 = arith.constant 0.000000e+00 : f32
    %97 = vector.broadcast %cst_67 : f32 to vector<1x128xf32>
    %98 = arith.maximumf %96, %97 : vector<1x128xf32>
    %99 = arith.truncf %98 : vector<1x128xf32> to vector<1x128xbf16>
    %c0_68 = arith.constant 0 : index
    %c0_69 = arith.constant 0 : index
    %100 = vector.load %arg23[%c0_68, %c0_69] : memref<128x4xbf16, #tpu.memory_space<vmem>>, vector<128x4xbf16>
    %cst_70 = arith.constant dense<0.000000e+00> : vector<1x4xf32>
    %101 = tpu.matmul %99, %100, %cst_70 {dimension_numbers = #tpu.dot_dimension_numbers<[1], [0], [0], [1], [0, 0, 1, 1], [], []>} : vector<1x128xbf16>, vector<128x4xbf16>, vector<1x4xf32> -> vector<1x4xf32>
    %c0_71 = arith.constant 0 : index
    %c0_72 = arith.constant 0 : index
    %102 = vector.load %arg24[%c0_71, %c0_72] : memref<1x4xf32, #tpu.memory_space<vmem>>, vector<1x4xf32>
    %103 = arith.addf %101, %102 : vector<1x4xf32>
    %104 = arith.negf %103 : vector<1x4xf32>
    %105 = math.exp %104 : vector<1x4xf32>
    %cst_73 = arith.constant 1.000000e+00 : f32
    %106 = vector.broadcast %cst_73 : f32 to vector<1x4xf32>
    %107 = arith.addf %106, %105 : vector<1x4xf32>
    %108 = arith.divf %106, %107 : vector<1x4xf32>
    %c0_74 = arith.constant 0 : index
    %c0_75 = arith.constant 0 : index
    %109 = vector.load %arg25[%c0_74, %c0_75] : memref<1x4xf32, #tpu.memory_space<vmem>>, vector<1x4xf32>
    tpu.vector_store %arg25[%c0_74, %c0_75], %108 {strides = array<i32>} : memref<1x4xf32, #tpu.memory_space<vmem>>, vector<1x4xf32>,
    return
  }
}

</mosaic_0001>

<bundles_post_ra>
// kernel: deep_graph_conv_surv_forward.1
= control target key start
LH: loop header
LB: loop body
LE: loop exit
PB: predicated region body
PF: predicated region fallthrough
CT: control target
= control target key end

     0   :  { %s4517_s0 = inlined_call_operand.vmem [shape: bf16[128,128], index: 0, kind: input, shape index: {}]   ;;  %s4518_s1 = inlined_call_operand.vmem [shape: bf16[128,256], index: 1, kind: input, shape index: {}]   ;;  %s4519_s2 = inlined_call_operand.vmem [shape: f32[1,128], index: 2, kind: input, shape index: {}]   ;;  %s4520_s3 = inlined_call_operand.vmem [shape: bf16[256,128], index: 3, kind: input, shape index: {}]   ;;  %s4521_s4 = inlined_call_operand.vmem [shape: f32[1,128], index: 4, kind: input, shape index: {}]   ;;  %s4522_s5 = inlined_call_operand.vmem [shape: bf16[128,128], index: 5, kind: input, shape index: {}]   ;;  %s4523_s6 = inlined_call_operand.vmem [shape: f32[1,128], index: 6, kind: input, shape index: {}]   ;;  %s4524_s7 = inlined_call_operand.vmem [shape: bf16[128,128], index: 7, kind: input, shape index: {}]   ;;  %s4525_s8 = inlined_call_operand.vmem [shape: f32[1,128], index: 8, kind: input, shape index: {}]   ;;  %s4526_s9 = inlined_call_operand.vmem [shape: bf16[128,128], index: 9, kind: input, shape index: {}]   ;;  %s4527_s10 = inlined_call_operand.vmem [shape: f32[1,128], index: 10, kind: input, shape index: {}]   ;;  %s4528_s11 = inlined_call_operand.vmem [shape: bf16[128,128], index: 11, kind: input, shape index: {}]   ;;  %s4529_s12 = inlined_call_operand.vmem [shape: f32[1,128], index: 12, kind: input, shape index: {}]   ;;  %s4530_s13 = inlined_call_operand.vmem [shape: bf16[128,128], index: 13, kind: input, shape index: {}]   ;;  %s4531_s14 = inlined_call_operand.vmem [shape: f32[1,128], index: 14, kind: input, shape index: {}]   ;;  %s4532_s15 = inlined_call_operand.vmem [shape: bf16[128,128], index: 15, kind: input, shape index: {}]   ;;  %s4533_s16 = inlined_call_operand.vmem [shape: f32[1,128], index: 16, kind: input, shape index: {}]   ;;  %s4534_s17 = inlined_call_operand.vmem [shape: bf16[128,128], index: 17, kind: input, shape index: {}]   ;;  %s4535_s18 = inlined_call_operand.vmem [shape: f32[1,128], index: 18, kind: input, shape index: {}]   ;;  %s4536_s19 = inlined_call_operand.vmem [shape: f32[1,128], index: 19, kind: input, shape index: {}]   ;;  %s4537_s20 = inlined_call_operand.<no memory space> [shape: f32[1,1], index: 20, kind: input, shape index: {}]   ;;  %s4538_s21 = inlined_call_operand.vmem [shape: bf16[128,128], index: 21, kind: input, shape index: {}]   ;;  %s4539_s22 = inlined_call_operand.vmem [shape: f32[1,128], index: 22, kind: input, shape index: {}]   ;;  %s4540_s23 = inlined_call_operand.vmem [shape: bf16[128,4], index: 23, kind: input, shape index: {}]   ;;  %s4541_s24 = inlined_call_operand.vmem [shape: f32[1,4], index: 24, kind: input, shape index: {}]   ;;  %s4542_s25 = inlined_call_operand.hbm [shape: f32[1,4], index: 25, kind: output, shape index: {}]  }
   0x1   :  { %4549 = sst [smem:[#allocation6_spill]] %s4517_s0  ;;  %v30_v0 = vstv %s4537_s20 }
   0x2   :  { %4550 = sst [smem:[#allocation7_spill]] %s4518_s1  ;;  %31 = vst [vmem:[#allocation2] sm:$0x1] %v30_v0 }
   0x3   :  { %4551 = sst [smem:[#allocation8_spill]] %s4519_s2 }
   0x4   :  { %4552 = sst [smem:[#allocation9_spill]] %s4520_s3 }
   0x5   :  { %4553 = sst [smem:[#allocation10_spill]] %s4521_s4 }
   0x6   :  { %4554 = sst [smem:[#allocation11_spill]] %s4522_s5 }
   0x7   :  { %4555 = sst [smem:[#allocation12_spill]] %s4523_s6 }
   0x8   :  { %4556 = sst [smem:[#allocation13_spill]] %s4524_s7 }
   0x9   :  { %4557 = sst [smem:[#allocation14_spill]] %s4525_s8 }
   0xa   :  { %4558 = sst [smem:[#allocation15_spill]] %s4526_s9 }
   0xb   :  { %s4559_s7 = sld [smem:[#allocation7_spill]]  ;;  %v3717_v3 = vmov 0  }
   0xc   :  { %276 = vmatprep.mubr.bf16.mxu0 %v3717_v3  ;;  %3462 = vset.pattern.permute.xlu0 %v3717_v3  ;;  %s4560_s29 = sld [smem:[#allocation9_spill]] }
   0xd   :  { %s4561_s8 = sld [smem:[#allocation6_spill]] }
  0x11   :  { %v3463_v1 = vld [vmem:[%s4559_s7 + $0x74] ss:$8 sps:$4 sm:$0xff]   ;;  %v3465_v2 = vld [vmem:[%s4559_s7 + $0x70] ss:$8 sps:$4 sm:$0xff]   ;;  %v3466_v4 = vld [vmem:[%s4559_s7 + $0x64] ss:$8 sps:$4 sm:$0xff]  }
  0x12   :  { %244 = vmatprep.subr.bf16.mxu0 %v3463_v1  ;;  %v3468_v5 = vld [vmem:[%s4559_s7 + $0x60] ss:$8 sps:$4 sm:$0xff]   ;;  %v3469_v6 = vld [vmem:[%s4559_s7 + $0x54] ss:$8 sps:$4 sm:$0xff]   ;;  %v3471_v7 = vld [vmem:[%s4559_s7 + $0x50] ss:$8 sps:$4 sm:$0xff]  }
  0x13   :  { %245 = vmatpush1.bf16.msra.mxu0 %v3465_v2  ;;  %v3472_v8 = vld [vmem:[%s4559_s7 + $0x44] ss:$8 sps:$4 sm:$0xff]   ;;  %v3474_v9 = vld [vmem:[%s4559_s7 + $0x40] ss:$8 sps:$4 sm:$0xff]   ;;  %v3475_v10 = vld [vmem:[%s4559_s7 + $0x34] ss:$8 sps:$4 sm:$0xff]  }
  0x14   :  { %246 = vmatprep.subr.bf16.mxu0 %v3466_v4  ;;  %v3477_v11 = vld [vmem:[%s4559_s7 + $0x30] ss:$8 sps:$4 sm:$0xff]   ;;  %v3478_v12 = vld [vmem:[%s4559_s7 + $0x24] ss:$8 sps:$4 sm:$0xff]   ;;  %v3480_v13 = vld [vmem:[%s4559_s7 + $0x20] ss:$8 sps:$4 sm:$0xff]  }
  0x15   :  { %v3481_v14 = vld [vmem:[%s4559_s7 + $0x14] ss:$8 sps:$4 sm:$0xff]   ;;  %v3483_v17 = vld [vmem:[%s4559_s7 + $0x10] ss:$8 sps:$4 sm:$0xff]   ;;  %v3499_v20 = vld [vmem:[%s4560_s29 + $0x68] sm:$0xff]  }
  0x16   :  { %v3495_v15 = vld [vmem:[%s4560_s29 + $0x78] sm:$0xff]   ;;  %v3497_v18 = vld [vmem:[%s4560_s29 + $0x70] sm:$0xff]   ;;  %v3484_v21 = vld [vmem:[%s4559_s7 + $0x4] ss:$8 sps:$4 sm:$0xff]  }
  0x17   :  { %247 = vmatpush1.bf16.msra.mxu0 %v3468_v5  ;;  %v3496_v16 = vld [vmem:[%s4560_s29 + $0x38] sm:$0xff]   ;;  %2800 = vmatprep.subr.bf16.mxu1 %v3495_v15  ;;  %v3498_v19 = vld [vmem:[%s4560_s29 + $0x30] sm:$0xff]   ;;  %v3486_v22 = vld [vmem:[%s4559_s7] ss:$8 sps:$4 sm:$0xff]  }
  0x18   :  { %248 = vmatprep.subr.bf16.mxu0 %v3469_v6  ;;  %2801 = vmatpush3.bf16.msra.mxu1 %v3496_v16  ;;  %v3500_v23 = vld [vmem:[%s4560_s29 + $0x28] sm:$0xff]   ;;  %v3501_v24 = vld [vmem:[%s4560_s29 + $0x60] sm:$0xff]   ;;  %v3503_v27 = vld [vmem:[%s4560_s29 + $0x58] sm:$0xff]  }
  0x19   :  { %2802 = vmatprep.subr.bf16.mxu1 %v3497_v18  ;;  %v3928_v25 = vld [vmem:[%s4561_s8] sm:$0xff]   ;;  %v3504_v28 = vld [vmem:[%s4560_s29 + $0x18] sm:$0xff]   ;;  %v3505_v29 = vld [vmem:[%s4560_s29 + $0x50] sm:$0xff]  }
  0x1a   :  { %v3502_v26 = vld [vmem:[%s4560_s29 + $0x20] sm:$0xff]   ;;  %v3947_v30 = vld [vmem:[%s4561_s8 + $0x8] sm:$0xff]   ;;  %v3506_v31 = vld [vmem:[%s4560_s29 + $0x10] sm:$0xff]  }
  0x1b   :  { %249 = vmatpush1.bf16.msra.mxu0 %v3471_v7  ;;  %v3957_v32 = vld [vmem:[%s4561_s8 + $0x10] sm:$0xff]   ;;  %v3964_v33 = vld [vmem:[%s4561_s8 + $0x18] sm:$0xff]   ;;  %v3971_v34 = vld [vmem:[%s4561_s8 + $0x20] sm:$0xff]  }
  0x1c   :  { %250 = vmatprep.subr.bf16.mxu0 %v3472_v8  ;;  %2803 = vmatpush3.bf16.msra.mxu1 %v3498_v19  ;;  %v3978_v35 = vld [vmem:[%s4561_s8 + $0x28] sm:$0xff]   ;;  %v3985_v36 = vld [vmem:[%s4561_s8 + $0x30] sm:$0xff]  }
  0x1d   :  { %2804 = vmatprep.subr.bf16.mxu1 %v3499_v20 }
  0x1f   :  { %251 = vmatpush1.bf16.msra.mxu0 %v3474_v9 }
  0x20   :  { %252 = vmatprep.subr.bf16.mxu0 %v3475_v10  ;;  %2805 = vmatpush3.bf16.msra.mxu1 %v3500_v23 }
  0x21   :  { %2806 = vmatprep.subr.bf16.mxu1 %v3501_v24 }
  0x23   :  { %253 = vmatpush1.bf16.msra.mxu0 %v3477_v11 }
  0x24   :  { %254 = vmatprep.subr.bf16.mxu0 %v3478_v12  ;;  %2807 = vmatpush3.bf16.msra.mxu1 %v3502_v26 }
  0x25   :  { %2808 = vmatprep.subr.bf16.mxu1 %v3503_v27 }
  0x27   :  { %255 = vmatpush1.bf16.msra.mxu0 %v3480_v13 }
  0x28   :  { %256 = vmatprep.subr.bf16.mxu0 %v3481_v14  ;;  %2809 = vmatpush3.bf16.msra.mxu1 %v3504_v28 }
  0x29   :  { %2810 = vmatprep.subr.bf16.mxu1 %v3505_v29 }
  0x2b   :  { %257 = vmatpush1.bf16.msra.mxu0 %v3483_v17 }
  0x2c   :  { %258 = vmatprep.subr.bf16.mxu0 %v3484_v21  ;;  %2811 = vmatpush3.bf16.msra.mxu1 %v3506_v31 }
  0x2f   :  { %259 = vmatpush1.bf16.msra.mxu0 %v3486_v22 }
  0x32   :  { %277 = vmatmul.mubr.bf16.vlgmr.msra.gmra.mxu0 %v3928_v25 }
  0x33   :  { %286 = vmatprep.mubr.bf16.mxu0 %v3717_v3 }
  0x3a   :  { %287 = vmatmul.mubr.bf16.gmra.mxu0 %v3947_v30 }
  0x3b   :  { %296 = vmatprep.mubr.bf16.mxu0 %v3717_v3 }
  0x42   :  { %297 = vmatmul.mubr.bf16.gmra.mxu0 %v3957_v32 }
  0x43   :  { %306 = vmatprep.mubr.bf16.mxu0 %v3717_v3 }
  0x4a   :  { %307 = vmatmul.mubr.bf16.gmra.mxu0 %v3964_v33 }
  0x4b   :  { %316 = vmatprep.mubr.bf16.mxu0 %v3717_v3 }
  0x52   :  { %317 = vmatmul.mubr.bf16.gmra.mxu0 %v3971_v34 }
  0x53   :  { %326 = vmatprep.mubr.bf16.mxu0 %v3717_v3 }
  0x5a   :  { %327 = vmatmul.mubr.bf16.gmra.mxu0 %v3978_v35 }
  0x5b   :  { %336 = vmatprep.mubr.bf16.mxu0 %v3717_v3 }
  0x5c   :  { %32 = vsyncpa [#allocation4], 0  ;;  %v3992_v37 = vld [vmem:[%s4561_s8 + $0x38] sm:$0xff]   ;;  %v3507_v38 = vld [vmem:[%s4560_s29 + $0x48] sm:$0xff]   ;;  %s4562_s5 = sld [smem:[#allocation11_spill]]  ;;  %vm3719_vm0 = vmmov 0  }
  0x5d   :  { %v3508_v39 = vld [vmem:[%s4560_s29 + $0x8] sm:$0xff]   ;;  %2812 = vmatprep.subr.bf16.mxu1 %v3507_v38  ;;  %v3509_v40 = vld [vmem:[%s4560_s29 + $0x40] sm:$0xff]   ;;  %s4563_s6 = sld [smem:[#allocation10_spill]]  ;;  %vm2346_vm1 = vcmask 1040384   ;;  %vm2647_vm2 = vcmask 24576  }
  0x5e   :  { %2813 = vmatpush3.bf16.msra.mxu1 %v3508_v39  ;;  %v3510_v41 = vld [vmem:[%s4560_s29] sm:$0xff]   ;;  %s4564_s29 = sld [smem:[#allocation13_spill]] }
  0x5f   :  { %2814 = vmatprep.subr.bf16.mxu1 %v3509_v40  ;;  %s4566_s7 = sld [smem:[#allocation15_spill]] }
  0x60   :  { %s4568_s0 = sld [smem:[#allocation8_spill]] }
  0x62   :  { %337 = vmatmul.mubr.bf16.gmra.mxu0 %v3985_v36  ;;  %2815 = vmatpush3.bf16.msra.mxu1 %v3510_v41  ;;  %v3511_v42 = vld [vmem:[%s4562_s5 + $0x38] sm:$0xff]   ;;  %v3512_v43 = vld [vmem:[%s4562_s5 + $0x30] sm:$0xff]   ;;  %v3513_v44 = vld [vmem:[%s4562_s5 + $0x28] sm:$0xff]  }
  0x63   :  { %346 = vmatprep.mubr.bf16.mxu0 %v3717_v3  ;;  %3060 = vmatprep.subr.bf16.mxu0 %v3511_v42  ;;  %v3514_v31 = vld [vmem:[%s4562_s5 + $0x20] sm:$0xff]   ;;  %v3515_v38 = vld [vmem:[%s4562_s5 + $0x18] sm:$0xff]   ;;  %v3516_v39 = vld [vmem:[%s4562_s5 + $0x10] sm:$0xff]  }
  0x64   :  { %3061 = vmatpush3.bf16.msra.mxu0 %v3511_v42  ;;  %v3518_v40 = vld [vmem:[%s4562_s5] sm:$0xff]  }
  0x65   :  { %3062 = vmatprep.subr.bf16.mxu0 %v3512_v43 }
  0x68   :  { %3063 = vmatpush3.bf16.msra.mxu0 %v3512_v43 }
  0x69   :  { %3064 = vmatprep.subr.bf16.mxu0 %v3513_v44 }
  0x6a   :  { %347 = vmatmul.mubr.bf16.gmra.mxu0 %v3992_v37 }
  0x6c   :  { %3065 = vmatpush3.bf16.msra.mxu0 %v3513_v44  ;;  %v4035_v44 = vld [vmem:[%s4563_s6] ss:$0 sm:$0xff] }
  0x6d   :  { %3066 = vmatprep.subr.bf16.mxu0 %v3514_v31 }
  0x70   :  { %3067 = vmatpush3.bf16.msra.mxu0 %v3514_v31 }
  0x71   :  { %3068 = vmatprep.subr.bf16.mxu0 %v3515_v38 }
  0x74   :  { %3069 = vmatpush3.bf16.msra.mxu0 %v3515_v38 }
  0x75   :  { %3070 = vmatprep.subr.bf16.mxu0 %v3516_v39 }
  0x78   :  { %3071 = vmatpush3.bf16.msra.mxu0 %v3516_v39 }
  0xf2   :  { %v278_v45 = vpop.f32.mrf.mxu0 }
  0xf4   :  { %v280_v46 = vpop.f32.mrf.mxu0 }
  0xf6   :  { %v282_v47 = vpop.f32.mrf.mxu0 }
  0xf7   :  { %v357_v50 = vpack.c.bf16 %v282_v47, %v278_v45 }
  0xf8   :  { %v284_v48 = vpop.f32.mrf.mxu0 }
  0xf9   :  { %v358_v49 = vpack.c.bf16 %v284_v48, %v280_v46 }
  0xfa   :  { %v288_v51 = vpop.f32.mrf.mxu0 }
  0xfb   :  { %540 = vmatprep.mubr.bf16.mxu1 %v358_v49 }
  0xfc   :  { %v290_v52 = vpop.f32.mrf.mxu0  ;;  %541 = vmatmul.mubr.bf16.vlgmr.msra.gmra.mxu1 %v357_v50 }
  0xfe   :  { %v292_v53 = vpop.f32.mrf.mxu0 }
  0xff   :  { %v359_v56 = vpack.c.bf16 %v292_v53, %v288_v51 }
 0x100   :  { %v294_v54 = vpop.f32.mrf.mxu0 }
 0x101   :  { %v360_v55 = vpack.c.bf16 %v294_v54, %v290_v52 }
 0x102   :  { %v298_v57 = vpop.f32.mrf.mxu0 }
 0x103   :  { %548 = vmatprep.mubr.bf16.mxu1 %v360_v55 }
 0x104   :  { %v300_v58 = vpop.f32.mrf.mxu0  ;;  %549 = vmatmul.mubr.bf16.gmra.mxu1 %v359_v56 }
 0x106   :  { %v302_v59 = vpop.f32.mrf.mxu0 }
 0x107   :  { %v361_v62 = vpack.c.bf16 %v302_v59, %v298_v57 }
 0x108   :  { %v304_v60 = vpop.f32.mrf.mxu0 }
 0x109   :  { %v362_v61 = vpack.c.bf16 %v304_v60, %v300_v58 }
 0x10a   :  { %v308_v63 = vpop.f32.mrf.mxu0 }
 0x10b   :  { %556 = vmatprep.mubr.bf16.mxu1 %v362_v61 }
 0x10c   :  { %v310_v0 = vpop.f32.mrf.mxu0  ;;  %557 = vmatmul.mubr.bf16.gmra.mxu1 %v361_v62 }
 0x10e   :  { %v312_v1 = vpop.f32.mrf.mxu0 }
 0x10f   :  { %v363_v4 = vpack.c.bf16 %v312_v1, %v308_v63 }
 0x110   :  { %v314_v2 = vpop.f32.mrf.mxu0 }
 0x111   :  { %v364_v3 = vpack.c.bf16 %v314_v2, %v310_v0 }
 0x112   :  { %v318_v5 = vpop.f32.mrf.mxu0 }
 0x113   :  { %564 = vmatprep.mubr.bf16.mxu1 %v364_v3 }
 0x114   :  { %v320_v6 = vpop.f32.mrf.mxu0  ;;  %565 = vmatmul.mubr.bf16.gmra.mxu1 %v363_v4 }
 0x116   :  { %v322_v7 = vpop.f32.mrf.mxu0 }
 0x117   :  { %v365_v10 = vpack.c.bf16 %v322_v7, %v318_v5 }
 0x118   :  { %v324_v8 = vpop.f32.mrf.mxu0 }
 0x119   :  { %v366_v9 = vpack.c.bf16 %v324_v8, %v320_v6 }
 0x11a   :  { %v328_v11 = vpop.f32.mrf.mxu0 }
 0x11b   :  { %572 = vmatprep.mubr.bf16.mxu1 %v366_v9 }
 0x11c   :  { %v330_v12 = vpop.f32.mrf.mxu0  ;;  %573 = vmatmul.mubr.bf16.gmra.mxu1 %v365_v10 }
 0x11e   :  { %v332_v13 = vpop.f32.mrf.mxu0 }
 0x11f   :  { %v367_v16 = vpack.c.bf16 %v332_v13, %v328_v11 }
 0x120   :  { %v334_v14 = vpop.f32.mrf.mxu0 }
 0x121   :  { %v368_v15 = vpack.c.bf16 %v334_v14, %v330_v12 }
 0x122   :  { %v338_v17 = vpop.f32.mrf.mxu0 }
 0x123   :  { %580 = vmatprep.mubr.bf16.mxu1 %v368_v15 }
 0x124   :  { %v340_v18 = vpop.f32.mrf.mxu0  ;;  %581 = vmatmul.mubr.bf16.gmra.mxu1 %v367_v16 }
 0x126   :  { %v342_v19 = vpop.f32.mrf.mxu0 }
 0x127   :  { %v369_v22 = vpack.c.bf16 %v342_v19, %v338_v17 }
 0x128   :  { %v344_v20 = vpop.f32.mrf.mxu0 }
 0x129   :  { %v370_v21 = vpack.c.bf16 %v344_v20, %v340_v18 }
 0x12a   :  { %v348_v23 = vpop.f32.mrf.mxu0 }
 0x12b   :  { %588 = vmatprep.mubr.bf16.mxu1 %v370_v21 }
 0x12c   :  { %v350_v24 = vpop.f32.mrf.mxu0  ;;  %589 = vmatmul.mubr.bf16.gmra.mxu1 %v369_v22 }
 0x12e   :  { %v352_v26 = vpop.f32.mrf.mxu0 }
 0x12f   :  { %v371_v29 = vpack.c.bf16 %v352_v26, %v348_v23 }
 0x130   :  { %v354_v27 = vpop.f32.mrf.mxu0 }
 0x131   :  { %v372_v28 = vpack.c.bf16 %v354_v27, %v350_v24 }
 0x133   :  { %596 = vmatprep.mubr.bf16.mxu1 %v372_v28 }
 0x134   :  { %597 = vmatmul.mubr.bf16.gmra.mxu1 %v371_v29 }
 0x135   :  { %3108 = vmatprep.mubr.bf16.mxu1 %v3928_v25  ;;  %v3517_v25 = vld [vmem:[%s4562_s5 + $0x8] sm:$0xff]   ;;  %s4565_s5 = sld [smem:[#allocation12_spill]] }
 0x136   :  { %3072 = vmatprep.subr.bf16.mxu0 %v3517_v25 }
 0x137   :  { %3073 = vmatpush3.bf16.msra.mxu0 %v3517_v25 }
 0x138   :  { %3074 = vmatprep.subr.bf16.mxu0 %v3518_v40 }
 0x13b   :  { %3075 = vmatpush3.bf16.msra.mxu0 %v3518_v40 }
 0x1bc   :  { %v2816_v41 = vpop.f32.mrf.mxu1 }
 0x1be   :  { %v2817_v42 = vpop.f32.mrf.mxu1 }
 0x1bf   :  { %v2818_v43 = vadd.f32 %v2817_v42, %v2816_v41 }
 0x1c0   :  { %v2819_v45 = vpop.f32.mrf.mxu1 }
 0x1c1   :  { %v543_v47 = vadd.f32 %v2818_v43, %v4035_v44 }
 0x1c2   :  { %v2820_v46 = vpop.f32.mrf.mxu1 }
 0x1c3   :  { %v2821_v48 = vadd.f32 %v2820_v46, %v2819_v45  ;;  %v605_v52 = vmax.f32 %v543_v47, 0.0 }
 0x1c4   :  { %v2822_v49 = vpop.f32.mrf.mxu1 }
 0x1c5   :  { %v546_v50 = vadd.f32 %v2821_v48, %v4035_v44 }
 0x1c6   :  { %v2823_v51 = vpop.f32.mrf.mxu1 }
 0x1c7   :  { %v606_v53 = vmax.f32 %v546_v50, 0.0  ;;  %v2824_v54 = vadd.f32 %v2823_v51, %v2822_v49 }
 0x1c8   :  { %v2825_v55 = vpop.f32.mrf.mxu1 }
 0x1c9   :  { %v621_v56 = vpack.c.bf16 %v606_v53, %v605_v52  ;;  %v551_v58 = vadd.f32 %v2824_v54, %v4035_v44 }
 0x1ca   :  { %v2826_v57 = vpop.f32.mrf.mxu1 }
 0x1cb   :  { %v2827_v59 = vadd.f32 %v2826_v57, %v2825_v55  ;;  %3076 = vmatprep.mubr.bf16.mxu0 %v621_v56  ;;  %v607_v63 = vmax.f32 %v551_v58, 0.0 }
 0x1cc   :  { %v2828_v60 = vpop.f32.mrf.mxu1 }
 0x1cd   :  { %v554_v61 = vadd.f32 %v2827_v59, %v4035_v44 }
 0x1ce   :  { %v2829_v62 = vpop.f32.mrf.mxu1 }
 0x1cf   :  { %v608_v0 = vmax.f32 %v554_v61, 0.0  ;;  %v2830_v1 = vadd.f32 %v2829_v62, %v2828_v60 }
 0x1d0   :  { %v2831_v2 = vpop.f32.mrf.mxu1 }
 0x1d1   :  { %v622_v3 = vpack.c.bf16 %v608_v0, %v607_v63  ;;  %v559_v5 = vadd.f32 %v2830_v1, %v4035_v44 }
 0x1d2   :  { %v2832_v4 = vpop.f32.mrf.mxu1 }
 0x1d3   :  { %v2833_v6 = vadd.f32 %v2832_v4, %v2831_v2  ;;  %3077 = vmatmul.mubr.bf16.vlgmr.msra.gmra.mxu0 %v622_v3  ;;  %v609_v10 = vmax.f32 %v559_v5, 0.0 }
 0x1d4   :  { %v2834_v7 = vpop.f32.mrf.mxu1 }
 0x1d5   :  { %v562_v8 = vadd.f32 %v2833_v6, %v4035_v44 }
 0x1d6   :  { %v2835_v9 = vpop.f32.mrf.mxu1 }
 0x1d7   :  { %v610_v11 = vmax.f32 %v562_v8, 0.0  ;;  %v2836_v12 = vadd.f32 %v2835_v9, %v2834_v7 }
 0x1d8   :  { %v2837_v13 = vpop.f32.mrf.mxu1 }
 0x1d9   :  { %v623_v14 = vpack.c.bf16 %v610_v11, %v609_v10  ;;  %v567_v16 = vadd.f32 %v2836_v12, %v4035_v44  ;;  %v3519_v10 = vld [vmem:[%s4564_s29 + $0x38] sm:$0xff]   ;;  %v3520_v11 = vld [vmem:[%s4564_s29 + $0x30] sm:$0xff]   ;;  %v3521_v12 = vld [vmem:[%s4564_s29 + $0x28] sm:$0xff]  }
 0x1da   :  { %v2838_v15 = vpop.f32.mrf.mxu1  ;;  %3124 = vmatprep.subr.bf16.mxu0 %v3519_v10 }
 0x1db   :  { %v2839_v17 = vadd.f32 %v2838_v15, %v2837_v13  ;;  %3080 = vmatprep.mubr.bf16.mxu0 %v623_v14  ;;  %v611_v21 = vmax.f32 %v567_v16, 0.0  ;;  %3125 = vmatpush3.bf16.msra.mxu0 %v3519_v10  ;;  %v3523_v13 = vld [vmem:[%s4564_s29 + $0x18] sm:$0xff]   ;;  %v3524_v14 = vld [vmem:[%s4564_s29 + $0x10] sm:$0xff]  }
 0x1dc   :  { %v2840_v18 = vpop.f32.mrf.mxu1  ;;  %3126 = vmatprep.subr.bf16.mxu0 %v3520_v11 }
 0x1dd   :  { %v570_v19 = vadd.f32 %v2839_v17, %v4035_v44 }
 0x1de   :  { %v2841_v20 = vpop.f32.mrf.mxu1 }
 0x1df   :  { %v612_v22 = vmax.f32 %v570_v19, 0.0  ;;  %v2842_v23 = vadd.f32 %v2841_v20, %v2840_v18  ;;  %3127 = vmatpush3.bf16.msra.mxu0 %v3520_v11 }
 0x1e0   :  { %v2843_v24 = vpop.f32.mrf.mxu1  ;;  %3128 = vmatprep.subr.bf16.mxu0 %v3521_v12 }
 0x1e1   :  { %v624_v26 = vpack.c.bf16 %v612_v22, %v611_v21  ;;  %v575_v28 = vadd.f32 %v2842_v23, %v4035_v44 }
 0x1e2   :  { %v2844_v27 = vpop.f32.mrf.mxu1 }
 0x1e3   :  { %v2845_v29 = vadd.f32 %v2844_v27, %v2843_v24  ;;  %3081 = vmatmul.mubr.bf16.gmra.mxu0 %v624_v26  ;;  %v613_v25 = vmax.f32 %v575_v28, 0.0 }
 0x1e4   :  { %v2846_v31 = vpop.f32.mrf.mxu1  ;;  %3129 = vmatpush3.bf16.msra.mxu0 %v3521_v12 }
 0x1e5   :  { %v578_v38 = vadd.f32 %v2845_v29, %v4035_v44  ;;  %v2704_v29 = vld [vmem:[%s4565_s5] ss:$0 sm:$0xff] }
 0x1e6   :  { %v2847_v39 = vpop.f32.mrf.mxu1 }
 0x1e7   :  { %v614_v40 = vmax.f32 %v578_v38, 0.0  ;;  %v2848_v41 = vadd.f32 %v2847_v39, %v2846_v31 }
 0x1e8   :  { %v2849_v42 = vpop.f32.mrf.mxu1 }
 0x1e9   :  { %v625_v43 = vpack.c.bf16 %v614_v40, %v613_v25  ;;  %v583_v46 = vadd.f32 %v2848_v41, %v4035_v44 }
 0x1ea   :  { %v2850_v45 = vpop.f32.mrf.mxu1 }
 0x1eb   :  { %v2851_v47 = vadd.f32 %v2850_v45, %v2849_v42  ;;  %3084 = vmatprep.mubr.bf16.mxu0 %v625_v43  ;;  %v615_v51 = vmax.f32 %v583_v46, 0.0 }
 0x1ec   :  { %v2852_v48 = vpop.f32.mrf.mxu1 }
 0x1ed   :  { %v586_v49 = vadd.f32 %v2851_v47, %v4035_v44 }
 0x1ee   :  { %v2853_v50 = vpop.f32.mrf.mxu1 }
 0x1ef   :  { %v616_v52 = vmax.f32 %v586_v49, 0.0  ;;  %v2854_v53 = vadd.f32 %v2853_v50, %v2852_v48 }
 0x1f0   :  { %v2855_v54 = vpop.f32.mrf.mxu1 }
 0x1f1   :  { %v626_v55 = vpack.c.bf16 %v616_v52, %v615_v51  ;;  %v591_v57 = vadd.f32 %v2854_v53, %v4035_v44 }
 0x1f2   :  { %v2856_v56 = vpop.f32.mrf.mxu1 }
 0x1f3   :  { %v2857_v58 = vadd.f32 %v2856_v56, %v2855_v54  ;;  %3085 = vmatmul.mubr.bf16.gmra.mxu0 %v626_v55  ;;  %v617_v62 = vmax.f32 %v591_v57, 0.0 }
 0x1f4   :  { %v2858_v59 = vpop.f32.mrf.mxu1 }
 0x1f5   :  { %v594_v60 = vadd.f32 %v2857_v58, %v4035_v44 }
 0x1f6   :  { %v2859_v61 = vpop.f32.mrf.mxu1 }
 0x1f7   :  { %v618_v63 = vmax.f32 %v594_v60, 0.0  ;;  %v2860_v0 = vadd.f32 %v2859_v61, %v2858_v59 }
 0x1f8   :  { %v2861_v1 = vpop.f32.mrf.mxu1 }
 0x1f9   :  { %v627_v2 = vpack.c.bf16 %v618_v63, %v617_v62  ;;  %v599_v4 = vadd.f32 %v2860_v0, %v4035_v44 }
 0x1fa   :  { %v2862_v3 = vpop.f32.mrf.mxu1 }
 0x1fb   :  { %v2863_v5 = vadd.f32 %v2862_v3, %v2861_v1  ;;  %3088 = vmatprep.mubr.bf16.mxu0 %v627_v2  ;;  %v619_v7 = vmax.f32 %v599_v4, 0.0 }
 0x1fd   :  { %v602_v6 = vadd.f32 %v2863_v5, %v4035_v44  ;;  %v3522_v44 = vld [vmem:[%s4564_s29 + $0x20] sm:$0xff]  }
 0x1fe   :  { %3130 = vmatprep.subr.bf16.mxu0 %v3522_v44 }
 0x1ff   :  { %v620_v8 = vmax.f32 %v602_v6, 0.0  ;;  %3131 = vmatpush3.bf16.msra.mxu0 %v3522_v44 }
 0x200   :  { %3132 = vmatprep.subr.bf16.mxu0 %v3523_v13 }
 0x201   :  { %v628_v9 = vpack.c.bf16 %v620_v8, %v619_v7 }
 0x203   :  { %3089 = vmatmul.mubr.bf16.gmra.mxu0 %v628_v9 }
 0x204   :  { %3133 = vmatpush3.bf16.msra.mxu0 %v3523_v13 }
 0x205   :  { %3134 = vmatprep.subr.bf16.mxu0 %v3524_v14 }
 0x208   :  { %3135 = vmatpush3.bf16.msra.mxu0 %v3524_v14 }
 0x293   :  { %v3078_v15 = vpop.f32.mrf.mxu0 }
 0x294   :  { %v743_v5 = vadd.f32 %v3078_v15, %v2704_v29  ;;  %v3525_v15 = vld [vmem:[%s4564_s29 + $0x8] sm:$0xff]  }
 0x295   :  { %v734_v16 = vpop.f32.mrf.mxu0  ;;  %3136 = vmatprep.subr.bf16.mxu0 %v3525_v15 }
 0x296   :  { %v799_v10 = vmax.f32 %v743_v5, 0.0  ;;  %v735_v11 = vadd.f32 %v2704_v29, %v734_v16  ;;  %3137 = vmatpush3.bf16.msra.mxu0 %v3525_v15 }
 0x297   :  { %v3079_v17 = vpop.f32.mrf.mxu0 }
 0x298   :  { %v746_v2 = vadd.f32 %v3079_v17, %v2704_v29  ;;  %v797_v13 = vmax.f32 %v735_v11, 0.0 }
 0x299   :  { %v737_v18 = vpop.f32.mrf.mxu0 }
 0x29a   :  { %v800_v7 = vmax.f32 %v746_v2, 0.0  ;;  %v738_v8 = vadd.f32 %v2704_v29, %v737_v18 }
 0x29c   :  { %v814_v12 = vpack.c.bf16 %v800_v7, %v799_v10  ;;  %v798_v44 = vmax.f32 %v738_v8, 0.0 }
 0x29e   :  { %v813_v14 = vpack.c.bf16 %v798_v44, %v797_v13 }
 0x2a3   :  { %v3082_v19 = vpop.f32.mrf.mxu0 }
 0x2a4   :  { %v759_v59 = vadd.f32 %v3082_v19, %v2704_v29 }
 0x2a5   :  { %v750_v20 = vpop.f32.mrf.mxu0 }
 0x2a6   :  { %v803_v0 = vmax.f32 %v759_v59, 0.0  ;;  %v751_v1 = vadd.f32 %v2704_v29, %v750_v20 }
 0x2a7   :  { %v3083_v21 = vpop.f32.mrf.mxu0 }
 0x2a8   :  { %v762_v56 = vadd.f32 %v3083_v21, %v2704_v29  ;;  %v801_v6 = vmax.f32 %v751_v1, 0.0 }
 0x2a9   :  { %v753_v22 = vpop.f32.mrf.mxu0 }
 0x2aa   :  { %v804_v61 = vmax.f32 %v762_v56, 0.0  ;;  %v754_v62 = vadd.f32 %v2704_v29, %v753_v22 }
 0x2ac   :  { %v816_v3 = vpack.c.bf16 %v804_v61, %v803_v0  ;;  %v802_v4 = vmax.f32 %v754_v62, 0.0 }
 0x2ae   :  { %v815_v9 = vpack.c.bf16 %v802_v4, %v801_v6 }
 0x2b3   :  { %v3086_v23 = vpop.f32.mrf.mxu0 }
 0x2b4   :  { %v775_v47 = vadd.f32 %v3086_v23, %v2704_v29 }
 0x2b5   :  { %v766_v24 = vpop.f32.mrf.mxu0 }
 0x2b6   :  { %v807_v54 = vmax.f32 %v775_v47, 0.0  ;;  %v767_v55 = vadd.f32 %v2704_v29, %v766_v24  ;;  %v3687_v47 = vld [vmem:[%s4561_s8] sm:$0xff]  }
 0x2b7   :  { %v3087_v26 = vpop.f32.mrf.mxu0 }
 0x2b8   :  { %v778_v42 = vadd.f32 %v3087_v26, %v2704_v29  ;;  %v805_v60 = vmax.f32 %v767_v55, 0.0 }
 0x2b9   :  { %v769_v27 = vpop.f32.mrf.mxu0 }
 0x2ba   :  { %v808_v51 = vmax.f32 %v778_v42, 0.0  ;;  %v770_v52 = vadd.f32 %v2704_v29, %v769_v27 }
 0x2bc   :  { %v818_v57 = vpack.c.bf16 %v808_v51, %v807_v54  ;;  %v806_v58 = vmax.f32 %v770_v52, 0.0 }
 0x2be   :  { %v817_v63 = vpack.c.bf16 %v806_v58, %v805_v60 }
 0x2c3   :  { %v3090_v28 = vpop.f32.mrf.mxu0 }
 0x2c4   :  { %v791_v38 = vadd.f32 %v3090_v28, %v2704_v29 }
 0x2c5   :  { %v782_v31 = vpop.f32.mrf.mxu0 }
 0x2c6   :  { %v783_v25 = vadd.f32 %v2704_v29, %v782_v31  ;;  %v811_v43 = vmax.f32 %v791_v38, 0.0 }
 0x2c7   :  { %v3091_v39 = vpop.f32.mrf.mxu0 }
 0x2c8   :  { %v794_v40 = vadd.f32 %v3091_v39, %v2704_v29  ;;  %v809_v48 = vmax.f32 %v783_v25, 0.0 }
 0x2c9   :  { %v785_v41 = vpop.f32.mrf.mxu0 }
 0x2ca   :  { %v812_v45 = vmax.f32 %v794_v40, 0.0  ;;  %v786_v46 = vadd.f32 %v2704_v29, %v785_v41 }
 0x2cc   :  { %v820_v49 = vpack.c.bf16 %v812_v45, %v811_v43  ;;  %v810_v50 = vmax.f32 %v786_v46, 0.0 }
 0x2ce   :  { %v819_v53 = vpack.c.bf16 %v810_v50, %v809_v48  ;;  %3092 = vmatprep.subr.bf16.mxu1 %v820_v49  ;;  %v3532_v48 = vld [vmem:[%s4566_s7 + $0x10] sm:$0xff]   ;;  %v3534_v50 = vld [vmem:[%s4566_s7] sm:$0xff]  }
 0x2cf   :  { %3093 = vmatpush3.bf16.msra.mxu1 %v820_v49  ;;  %v3533_v49 = vld [vmem:[%s4566_s7 + $0x8] sm:$0xff]  }
 0x2d0   :  { %3094 = vmatprep.subr.bf16.mxu1 %v819_v53 }
 0x2d3   :  { %3095 = vmatpush3.bf16.msra.mxu1 %v819_v53 }
 0x2d4   :  { %3096 = vmatprep.subr.bf16.mxu1 %v818_v57 }
 0x2d7   :  { %3097 = vmatpush3.bf16.msra.mxu1 %v818_v57 }
 0x2d8   :  { %3098 = vmatprep.subr.bf16.mxu1 %v817_v63 }
 0x2db   :  { %3099 = vmatpush3.bf16.msra.mxu1 %v817_v63 }
 0x2dc   :  { %3100 = vmatprep.subr.bf16.mxu1 %v816_v3 }
 0x2df   :  { %3101 = vmatpush3.bf16.msra.mxu1 %v816_v3 }
 0x2e0   :  { %3102 = vmatprep.subr.bf16.mxu1 %v815_v9 }
 0x2e3   :  { %3103 = vmatpush3.bf16.msra.mxu1 %v815_v9 }
 0x2e4   :  { %3104 = vmatprep.subr.bf16.mxu1 %v814_v12 }
 0x2e7   :  { %3105 = vmatpush3.bf16.msra.mxu1 %v814_v12 }
 0x2e8   :  { %3106 = vmatprep.subr.bf16.mxu1 %v813_v14 }
 0x2eb   :  { %3107 = vmatpush3.bf16.msra.mxu1 %v813_v14 }
 0x2ee   :  { %3109 = vmatmul.mubr.bf16.vlgmr.msra.gmra.mxu1 %v3947_v30  ;;  %v3526_v30 = vld [vmem:[%s4564_s29] sm:$0xff]   ;;  %s4567_s29 = sld [smem:[#allocation14_spill]] }
 0x2ef   :  { %3112 = vmatprep.mubr.bf16.mxu1 %v3957_v32  ;;  %3138 = vmatprep.subr.bf16.mxu0 %v3526_v30  ;;  %v3527_v32 = vld [vmem:[%s4566_s7 + $0x38] sm:$0xff]  }
 0x2f0   :  { %3139 = vmatpush3.bf16.msra.mxu0 %v3526_v30  ;;  %3156 = vmatprep.subr.bf16.mxu1 %v3527_v32 }
 0x2f1   :  { %3157 = vmatpush3.bf16.msra.mxu1 %v3527_v32 }
 0x2f4   :  { %v2713_v53 = vld [vmem:[%s4567_s29] ss:$0 sm:$0xff] }
 0x2f6   :  { %3113 = vmatmul.mubr.bf16.gmra.mxu1 %v3964_v33  ;;  %v3528_v33 = vld [vmem:[%s4566_s7 + $0x30] sm:$0xff]  }
 0x2f7   :  { %3116 = vmatprep.mubr.bf16.mxu1 %v3971_v34  ;;  %3158 = vmatprep.subr.bf16.mxu1 %v3528_v33  ;;  %v3529_v34 = vld [vmem:[%s4566_s7 + $0x28] sm:$0xff]  }
 0x2f8   :  { %3159 = vmatpush3.bf16.msra.mxu1 %v3528_v33 }
 0x2f9   :  { %3160 = vmatprep.subr.bf16.mxu1 %v3529_v34 }
 0x2fc   :  { %3161 = vmatpush3.bf16.msra.mxu1 %v3529_v34 }
 0x2fe   :  { %3117 = vmatmul.mubr.bf16.gmra.mxu1 %v3978_v35  ;;  %v3530_v35 = vld [vmem:[%s4566_s7 + $0x20] sm:$0xff]  }
 0x2ff   :  { %3120 = vmatprep.mubr.bf16.mxu1 %v3985_v36  ;;  %3162 = vmatprep.subr.bf16.mxu1 %v3530_v35  ;;  %v3531_v36 = vld [vmem:[%s4566_s7 + $0x18] sm:$0xff]  }
 0x300   :  { %3163 = vmatpush3.bf16.msra.mxu1 %v3530_v35 }
 0x301   :  { %3164 = vmatprep.subr.bf16.mxu1 %v3531_v36 }
 0x304   :  { %3165 = vmatpush3.bf16.msra.mxu1 %v3531_v36 }
 0x305   :  { %3166 = vmatprep.subr.bf16.mxu1 %v3532_v48 }
 0x306   :  { %3121 = vmatmul.mubr.bf16.gmra.mxu1 %v3992_v37 }
 0x308   :  { %3167 = vmatpush3.bf16.msra.mxu1 %v3532_v48  ;;  %v3539_v48 = vld [vmem:[%s4528_s11 + $0x18] sm:$0xff]  }
 0x309   :  { %3168 = vmatprep.subr.bf16.mxu1 %v3533_v49 }
 0x30c   :  { %3169 = vmatpush3.bf16.msra.mxu1 %v3533_v49  ;;  %v3540_v49 = vld [vmem:[%s4528_s11 + $0x10] sm:$0xff]  }
 0x30d   :  { %3170 = vmatprep.subr.bf16.mxu1 %v3534_v50 }
 0x310   :  { %3171 = vmatpush3.bf16.msra.mxu1 %v3534_v50 }
 0x3ae   :  { %v3110_v37 = vpop.f32.mrf.mxu1 }
 0x3b0   :  { %v855_v16 = vpop.f32.mrf.mxu1 }
 0x3b2   :  { %v3111_v17 = vpop.f32.mrf.mxu1 }
 0x3b3   :  { %v919_v20 = vpack.c.bf16 %v3111_v17, %v3110_v37 }
 0x3b4   :  { %v858_v18 = vpop.f32.mrf.mxu1 }
 0x3b5   :  { %v918_v19 = vpack.c.bf16 %v858_v18, %v855_v16 }
 0x3b6   :  { %v3114_v21 = vpop.f32.mrf.mxu1 }
 0x3b7   :  { %3140 = vmatprep.mubr.bf16.mxu0 %v918_v19 }
 0x3b8   :  { %v871_v22 = vpop.f32.mrf.mxu1  ;;  %3141 = vmatmul.mubr.bf16.vlgmr.msra.gmra.mxu0 %v919_v20 }
 0x3ba   :  { %v3115_v23 = vpop.f32.mrf.mxu1 }
 0x3bb   :  { %v921_v27 = vpack.c.bf16 %v3115_v23, %v3114_v21 }
 0x3bc   :  { %v874_v24 = vpop.f32.mrf.mxu1 }
 0x3bd   :  { %v920_v26 = vpack.c.bf16 %v874_v24, %v871_v22 }
 0x3be   :  { %v3118_v28 = vpop.f32.mrf.mxu1 }
 0x3bf   :  { %3144 = vmatprep.mubr.bf16.mxu0 %v920_v26 }
 0x3c0   :  { %v887_v29 = vpop.f32.mrf.mxu1  ;;  %3145 = vmatmul.mubr.bf16.gmra.mxu0 %v921_v27 }
 0x3c2   :  { %v3119_v31 = vpop.f32.mrf.mxu1 }
 0x3c3   :  { %v923_v25 = vpack.c.bf16 %v3119_v31, %v3118_v28 }
 0x3c4   :  { %v890_v38 = vpop.f32.mrf.mxu1 }
 0x3c5   :  { %v922_v39 = vpack.c.bf16 %v890_v38, %v887_v29 }
 0x3c6   :  { %v3122_v40 = vpop.f32.mrf.mxu1 }
 0x3c7   :  { %3148 = vmatprep.mubr.bf16.mxu0 %v922_v39 }
 0x3c8   :  { %v903_v41 = vpop.f32.mrf.mxu1  ;;  %3149 = vmatmul.mubr.bf16.gmra.mxu0 %v923_v25 }
 0x3ca   :  { %v3123_v42 = vpop.f32.mrf.mxu1 }
 0x3cb   :  { %v925_v46 = vpack.c.bf16 %v3123_v42, %v3122_v40 }
 0x3cc   :  { %v906_v43 = vpop.f32.mrf.mxu1 }
 0x3cd   :  { %v924_v45 = vpack.c.bf16 %v906_v43, %v903_v41  ;;  %v3535_v43 = vld [vmem:[%s4528_s11 + $0x38] sm:$0xff]  }
 0x3ce   :  { %3220 = vmatprep.subr.bf16.mxu1 %v3535_v43 }
 0x3cf   :  { %3152 = vmatprep.mubr.bf16.mxu0 %v924_v45  ;;  %v3536_v45 = vld [vmem:[%s4528_s11 + $0x30] sm:$0xff]  }
 0x3d0   :  { %3153 = vmatmul.mubr.bf16.gmra.mxu0 %v925_v46  ;;  %v3537_v46 = vld [vmem:[%s4528_s11 + $0x28] sm:$0xff]  }
 0x3d1   :  { %3204 = vmatprep.mubr.bf16.mxu0 %v3687_v47  ;;  %v3538_v47 = vld [vmem:[%s4528_s11 + $0x20] sm:$0xff]  }
 0x478   :  { %v3142_v51 = vpop.f32.mrf.mxu0 }
 0x479   :  { %v1040_v57 = vadd.f32 %v3142_v51, %v2713_v53 }
 0x47a   :  { %v1031_v52 = vpop.f32.mrf.mxu0 }
 0x47b   :  { %v1032_v55 = vadd.f32 %v2713_v53, %v1031_v52  ;;  %v1096_v0 = vmax.f32 %v1040_v57, 0.0 }
 0x47c   :  { %v3143_v54 = vpop.f32.mrf.mxu0 }
 0x47d   :  { %v1043_v56 = vadd.f32 %v3143_v54, %v2713_v53  ;;  %v1094_v62 = vmax.f32 %v1032_v55, 0.0 }
 0x47e   :  { %v1034_v58 = vpop.f32.mrf.mxu0 }
 0x47f   :  { %v1035_v59 = vadd.f32 %v2713_v53, %v1034_v58  ;;  %v1097_v60 = vmax.f32 %v1043_v56, 0.0 }
 0x480   :  { %v3146_v61 = vpop.f32.mrf.mxu0 }
 0x481   :  { %v1095_v63 = vmax.f32 %v1035_v59, 0.0  ;;  %v1111_v3 = vpack.c.bf16 %v1097_v60, %v1096_v0  ;;  %v1056_v7 = vadd.f32 %v3146_v61, %v2713_v53 }
 0x482   :  { %v1047_v1 = vpop.f32.mrf.mxu0 }
 0x483   :  { %v1110_v2 = vpack.c.bf16 %v1095_v63, %v1094_v62  ;;  %v1048_v5 = vadd.f32 %v2713_v53, %v1047_v1  ;;  %v1100_v13 = vmax.f32 %v1056_v7, 0.0  ;;  %v2722_v63 = vld [vmem:[%s4527_s10] ss:$0 sm:$0xff] }
 0x484   :  { %v3147_v4 = vpop.f32.mrf.mxu0 }
 0x485   :  { %v1059_v6 = vadd.f32 %v3147_v4, %v2713_v53  ;;  %3172 = vmatprep.mubr.bf16.mxu1 %v1110_v2  ;;  %v1098_v12 = vmax.f32 %v1048_v5, 0.0 }
 0x486   :  { %v1050_v8 = vpop.f32.mrf.mxu0  ;;  %3173 = vmatmul.mubr.bf16.vlgmr.msra.gmra.mxu1 %v1111_v3 }
 0x487   :  { %v1051_v9 = vadd.f32 %v2713_v53, %v1050_v8  ;;  %v1101_v10 = vmax.f32 %v1059_v6, 0.0  ;;  %3221 = vmatpush3.bf16.msra.mxu1 %v3535_v43  ;;  %v3689_v43 = vld [vmem:[%s4561_s8 + $0x10] sm:$0xff]  }
 0x488   :  { %v3150_v11 = vpop.f32.mrf.mxu0  ;;  %3222 = vmatprep.subr.bf16.mxu1 %v3536_v45 }
 0x489   :  { %v1099_v44 = vmax.f32 %v1051_v9, 0.0  ;;  %v1113_v30 = vpack.c.bf16 %v1101_v10, %v1100_v13  ;;  %v1072_v35 = vadd.f32 %v3150_v11, %v2713_v53 }
 0x48a   :  { %v1063_v14 = vpop.f32.mrf.mxu0 }
 0x48b   :  { %v1112_v15 = vpack.c.bf16 %v1099_v44, %v1098_v12  ;;  %v1064_v33 = vadd.f32 %v2713_v53, %v1063_v14  ;;  %v1104_v20 = vmax.f32 %v1072_v35, 0.0  ;;  %3223 = vmatpush3.bf16.msra.mxu1 %v3536_v45  ;;  %v3690_v45 = vld [vmem:[%s4561_s8 + $0x18] sm:$0xff]  }
 0x48c   :  { %v3151_v32 = vpop.f32.mrf.mxu0  ;;  %3224 = vmatprep.subr.bf16.mxu1 %v3537_v46 }
 0x48d   :  { %v1075_v34 = vadd.f32 %v3151_v32, %v2713_v53  ;;  %3176 = vmatprep.mubr.bf16.mxu1 %v1112_v15  ;;  %v1102_v18 = vmax.f32 %v1064_v33, 0.0 }
 0x48e   :  { %v1066_v36 = vpop.f32.mrf.mxu0  ;;  %3177 = vmatmul.mubr.bf16.gmra.mxu1 %v1113_v30 }
 0x48f   :  { %v1067_v37 = vadd.f32 %v2713_v53, %v1066_v36  ;;  %v1105_v16 = vmax.f32 %v1075_v34, 0.0  ;;  %3225 = vmatpush3.bf16.msra.mxu1 %v3537_v46  ;;  %v3691_v46 = vld [vmem:[%s4561_s8 + $0x20] sm:$0xff]  }
 0x490   :  { %v3154_v17 = vpop.f32.mrf.mxu0  ;;  %3226 = vmatprep.subr.bf16.mxu1 %v3538_v47 }
 0x491   :  { %v1103_v19 = vmax.f32 %v1067_v37, 0.0  ;;  %v1115_v23 = vpack.c.bf16 %v1105_v16, %v1104_v20  ;;  %v1088_v28 = vadd.f32 %v3154_v17, %v2713_v53 }
 0x492   :  { %v1079_v21 = vpop.f32.mrf.mxu0 }
 0x493   :  { %v1114_v22 = vpack.c.bf16 %v1103_v19, %v1102_v18  ;;  %v1080_v26 = vadd.f32 %v2713_v53, %v1079_v21  ;;  %v1108_v40 = vmax.f32 %v1088_v28, 0.0  ;;  %3227 = vmatpush3.bf16.msra.mxu1 %v3538_v47  ;;  %v3692_v47 = vld [vmem:[%s4561_s8 + $0x28] sm:$0xff]  }
 0x494   :  { %v3155_v24 = vpop.f32.mrf.mxu0  ;;  %3228 = vmatprep.subr.bf16.mxu1 %v3539_v48 }
 0x495   :  { %v1091_v27 = vadd.f32 %v3155_v24, %v2713_v53  ;;  %3180 = vmatprep.mubr.bf16.mxu1 %v1114_v22  ;;  %v1106_v39 = vmax.f32 %v1080_v26, 0.0 }
 0x496   :  { %v1082_v29 = vpop.f32.mrf.mxu0  ;;  %3181 = vmatmul.mubr.bf16.gmra.mxu1 %v1115_v23 }
 0x497   :  { %v1083_v31 = vadd.f32 %v2713_v53, %v1082_v29  ;;  %v1109_v38 = vmax.f32 %v1091_v27, 0.0  ;;  %3229 = vmatpush3.bf16.msra.mxu1 %v3539_v48  ;;  %v3693_v48 = vld [vmem:[%s4561_s8 + $0x30] sm:$0xff]  }
 0x498   :  { %3230 = vmatprep.subr.bf16.mxu1 %v3540_v49 }
 0x499   :  { %v1107_v25 = vmax.f32 %v1083_v31, 0.0  ;;  %v1117_v42 = vpack.c.bf16 %v1109_v38, %v1108_v40 }
 0x49b   :  { %v1116_v41 = vpack.c.bf16 %v1107_v25, %v1106_v39  ;;  %3231 = vmatpush3.bf16.msra.mxu1 %v3540_v49  ;;  %v3694_v49 = vld [vmem:[%s4561_s8 + $0x38] sm:$0xff]  }
 0x49d   :  { %3184 = vmatprep.mubr.bf16.mxu1 %v1116_v41 }
 0x49e   :  { %3185 = vmatmul.mubr.bf16.gmra.mxu1 %v1117_v42  ;;  %v3688_v42 = vld [vmem:[%s4561_s8 + $0x8] sm:$0xff]  }
 0x546   :  { %v3174_v50 = vpop.f32.mrf.mxu1 }
 0x547   :  { %v1232_v24 = vadd.f32 %v3174_v50, %v2722_v63  ;;  %v3541_v50 = vld [vmem:[%s4528_s11 + $0x8] sm:$0xff]  }
 0x548   :  { %v1223_v51 = vpop.f32.mrf.mxu1  ;;  %3232 = vmatprep.subr.bf16.mxu1 %v3541_v50 }
 0x549   :  { %v1288_v31 = vmax.f32 %v1232_v24, 0.0  ;;  %v1224_v38 = vadd.f32 %v2722_v63, %v1223_v51  ;;  %3233 = vmatpush3.bf16.msra.mxu1 %v3541_v50  ;;  %v3542_v51 = vld [vmem:[%s4528_s11] sm:$0xff]   ;;  %v3554_v50 = vld [vmem:[%s4534_s17 + $0x28] sm:$0xff]  }
 0x54a   :  { %v3175_v52 = vpop.f32.mrf.mxu1  ;;  %3234 = vmatprep.subr.bf16.mxu1 %v3542_v51 }
 0x54b   :  { %v1235_v21 = vadd.f32 %v3175_v52, %v2722_v63  ;;  %v1286_v40 = vmax.f32 %v1224_v38, 0.0  ;;  %v3543_v52 = vld [vmem:[%s4530_s13 + $0x38] sm:$0xff]  }
 0x54c   :  { %v1226_v53 = vpop.f32.mrf.mxu1 }
 0x54d   :  { %v1289_v27 = vmax.f32 %v1235_v21, 0.0  ;;  %v1227_v28 = vadd.f32 %v2722_v63, %v1226_v53  ;;  %3235 = vmatpush3.bf16.msra.mxu1 %v3542_v51  ;;  %v3544_v53 = vld [vmem:[%s4530_s13 + $0x30] sm:$0xff]  }
 0x54e   :  { %v3178_v54 = vpop.f32.mrf.mxu1 }
 0x54f   :  { %v1248_v36 = vadd.f32 %v3178_v54, %v2722_v63  ;;  %v1303_v39 = vpack.c.bf16 %v1289_v27, %v1288_v31  ;;  %v1287_v25 = vmax.f32 %v1227_v28, 0.0  ;;  %v3545_v54 = vld [vmem:[%s4530_s13 + $0x28] sm:$0xff]  }
 0x550   :  { %v1239_v55 = vpop.f32.mrf.mxu1 }
 0x551   :  { %v1292_v19 = vmax.f32 %v1248_v36, 0.0  ;;  %v1240_v20 = vadd.f32 %v2722_v63, %v1239_v55  ;;  %v1302_v41 = vpack.c.bf16 %v1287_v25, %v1286_v40  ;;  %v3546_v55 = vld [vmem:[%s4530_s13 + $0x20] sm:$0xff]   ;;  %v3555_v36 = vld [vmem:[%s4532_s15 + $0x30] sm:$0xff]  }
 0x552   :  { %v3179_v56 = vpop.f32.mrf.mxu1 }
 0x553   :  { %v1251_v33 = vadd.f32 %v3179_v56, %v2722_v63  ;;  %v1290_v26 = vmax.f32 %v1240_v20, 0.0  ;;  %v3547_v56 = vld [vmem:[%s4530_s13 + $0x18] sm:$0xff]  }
 0x554   :  { %v1242_v57 = vpop.f32.mrf.mxu1 }
 0x555   :  { %v1293_v16 = vmax.f32 %v1251_v33, 0.0  ;;  %v1243_v17 = vadd.f32 %v2722_v63, %v1242_v57  ;;  %v3550_v33 = vld [vmem:[%s4530_s13] sm:$0xff]  }
 0x556   :  { %v3182_v58 = vpop.f32.mrf.mxu1 }
 0x557   :  { %v1264_v10 = vadd.f32 %v3182_v58, %v2722_v63  ;;  %v1305_v22 = vpack.c.bf16 %v1293_v16, %v1292_v19  ;;  %v1291_v23 = vmax.f32 %v1243_v17, 0.0 }
 0x558   :  { %v1255_v59 = vpop.f32.mrf.mxu1 }
 0x559   :  { %v1296_v30 = vmax.f32 %v1264_v10, 0.0  ;;  %v1256_v32 = vadd.f32 %v2722_v63, %v1255_v59  ;;  %v1304_v29 = vpack.c.bf16 %v1291_v23, %v1290_v26 }
 0x55a   :  { %v3183_v60 = vpop.f32.mrf.mxu1 }
 0x55b   :  { %v1267_v6 = vadd.f32 %v3183_v60, %v2722_v63  ;;  %v1294_v37 = vmax.f32 %v1256_v32, 0.0  ;;  %v3549_v32 = vld [vmem:[%s4530_s13 + $0x8] sm:$0xff]  }
 0x55c   :  { %v1258_v61 = vpop.f32.mrf.mxu1 }
 0x55d   :  { %v1297_v13 = vmax.f32 %v1267_v6, 0.0  ;;  %v1259_v14 = vadd.f32 %v2722_v63, %v1258_v61 }
 0x55e   :  { %v3186_v62 = vpop.f32.mrf.mxu1 }
 0x55f   :  { %v1280_v1 = vadd.f32 %v3186_v62, %v2722_v63  ;;  %v1307_v34 = vpack.c.bf16 %v1297_v13, %v1296_v30  ;;  %v1295_v35 = vmax.f32 %v1259_v14, 0.0  ;;  %v3548_v30 = vld [vmem:[%s4530_s13 + $0x10] sm:$0xff]  }
 0x560   :  { %v1271_v0 = vpop.f32.mrf.mxu1 }
 0x561   :  { %v1272_v3 = vadd.f32 %v2722_v63, %v1271_v0  ;;  %v1300_v7 = vmax.f32 %v1280_v1, 0.0  ;;  %v1306_v18 = vpack.c.bf16 %v1295_v35, %v1294_v37  ;;  %v3553_v35 = vld [vmem:[%s4532_s15 + $0x38] sm:$0xff]   ;;  %v3557_v37 = vld [vmem:[%s4532_s15 + $0x28] sm:$0xff]  }
 0x562   :  { %v3187_v2 = vpop.f32.mrf.mxu1  ;;  %3284 = vmatprep.subr.bf16.mxu1 %v3553_v35 }
 0x563   :  { %v1283_v4 = vadd.f32 %v3187_v2, %v2722_v63  ;;  %v1298_v11 = vmax.f32 %v1272_v3, 0.0 }
 0x564   :  { %v1274_v5 = vpop.f32.mrf.mxu1 }
 0x565   :  { %v1301_v8 = vmax.f32 %v1283_v4, 0.0  ;;  %v1275_v9 = vadd.f32 %v2722_v63, %v1274_v5 }
 0x567   :  { %v1309_v12 = vpack.c.bf16 %v1301_v8, %v1300_v7  ;;  %v1299_v44 = vmax.f32 %v1275_v9, 0.0 }
 0x569   :  { %v1308_v15 = vpack.c.bf16 %v1299_v44, %v1298_v11  ;;  %3188 = vmatprep.subr.bf16.mxu0 %v1309_v12 }
 0x56a   :  { %3189 = vmatpush3.bf16.msra.mxu0 %v1309_v12 }
 0x56b   :  { %3190 = vmatprep.subr.bf16.mxu0 %v1308_v15 }
 0x56e   :  { %3191 = vmatpush3.bf16.msra.mxu0 %v1308_v15 }
 0x56f   :  { %3192 = vmatprep.subr.bf16.mxu0 %v1307_v34 }
 0x572   :  { %3193 = vmatpush3.bf16.msra.mxu0 %v1307_v34  ;;  %v3551_v34 = vld [vmem:[%s4534_s17 + $0x38] sm:$0xff]  }
 0x573   :  { %3194 = vmatprep.subr.bf16.mxu0 %v1306_v18 }
 0x576   :  { %3195 = vmatpush3.bf16.msra.mxu0 %v1306_v18  ;;  %v4204_v18 = vld [vmem:[%s4529_s12] ss:$0 sm:$0xff] }
 0x577   :  { %3196 = vmatprep.subr.bf16.mxu0 %v1305_v22 }
 0x57a   :  { %3197 = vmatpush3.bf16.msra.mxu0 %v1305_v22 }
 0x57b   :  { %3198 = vmatprep.subr.bf16.mxu0 %v1304_v29 }
 0x57e   :  { %3199 = vmatpush3.bf16.msra.mxu0 %v1304_v29 }
 0x57f   :  { %3200 = vmatprep.subr.bf16.mxu0 %v1303_v39 }
 0x582   :  { %3201 = vmatpush3.bf16.msra.mxu0 %v1303_v39 }
 0x583   :  { %3202 = vmatprep.subr.bf16.mxu0 %v1302_v41 }
 0x586   :  { %3203 = vmatpush3.bf16.msra.mxu0 %v1302_v41  ;;  %v3552_v41 = vld [vmem:[%s4534_s17 + $0x30] sm:$0xff]  }
 0x587   :  { %3252 = vmatprep.subr.bf16.mxu0 %v3543_v52 }
 0x589   :  { %3205 = vmatmul.mubr.bf16.vlgmr.msra.gmra.mxu0 %v3688_v42 }
 0x58a   :  { %3208 = vmatprep.mubr.bf16.mxu0 %v3689_v43  ;;  %3253 = vmatpush3.bf16.msra.mxu0 %v3543_v52 }
 0x58b   :  { %3254 = vmatprep.subr.bf16.mxu0 %v3544_v53 }
 0x58e   :  { %3255 = vmatpush3.bf16.msra.mxu0 %v3544_v53 }
 0x58f   :  { %3256 = vmatprep.subr.bf16.mxu0 %v3545_v54 }
 0x591   :  { %3209 = vmatmul.mubr.bf16.gmra.mxu0 %v3690_v45 }
 0x592   :  { %3212 = vmatprep.mubr.bf16.mxu0 %v3691_v46  ;;  %3257 = vmatpush3.bf16.msra.mxu0 %v3545_v54 }
 0x593   :  { %3258 = vmatprep.subr.bf16.mxu0 %v3546_v55 }
 0x596   :  { %3259 = vmatpush3.bf16.msra.mxu0 %v3546_v55 }
 0x597   :  { %3260 = vmatprep.subr.bf16.mxu0 %v3547_v56 }
 0x599   :  { %3213 = vmatmul.mubr.bf16.gmra.mxu0 %v3692_v47 }
 0x59a   :  { %3216 = vmatprep.mubr.bf16.mxu0 %v3693_v48  ;;  %3261 = vmatpush3.bf16.msra.mxu0 %v3547_v56 }
 0x59b   :  { %3262 = vmatprep.subr.bf16.mxu0 %v3548_v30 }
 0x59e   :  { %3263 = vmatpush3.bf16.msra.mxu0 %v3548_v30 }
 0x59f   :  { %3264 = vmatprep.subr.bf16.mxu0 %v3549_v32 }
 0x5a1   :  { %3217 = vmatmul.mubr.bf16.gmra.mxu0 %v3694_v49 }
 0x5a2   :  { %3265 = vmatpush3.bf16.msra.mxu0 %v3549_v32 }
 0x5a3   :  { %3266 = vmatprep.subr.bf16.mxu0 %v3550_v33 }
 0x5a6   :  { %3267 = vmatpush3.bf16.msra.mxu0 %v3550_v33 }
 0x5a7   :  { %3316 = vmatprep.subr.bf16.mxu0 %v3551_v34 }
 0x649   :  { %v3206_v57 = vpop.f32.mrf.mxu0 }
 0x64b   :  { %v1344_v58 = vpop.f32.mrf.mxu0 }
 0x64d   :  { %v3207_v59 = vpop.f32.mrf.mxu0 }
 0x64e   :  { %v1408_v62 = vpack.c.bf16 %v3207_v59, %v3206_v57 }
 0x64f   :  { %v1347_v60 = vpop.f32.mrf.mxu0 }
 0x650   :  { %v1407_v61 = vpack.c.bf16 %v1347_v60, %v1344_v58  ;;  %v3556_v58 = vld [vmem:[%s4534_s17 + $0x20] sm:$0xff]  }
 0x651   :  { %v3210_v63 = vpop.f32.mrf.mxu0 }
 0x652   :  { %3236 = vmatprep.mubr.bf16.mxu1 %v1407_v61 }
 0x653   :  { %v1360_v0 = vpop.f32.mrf.mxu0  ;;  %3237 = vmatmul.mubr.bf16.vlgmr.msra.gmra.mxu1 %v1408_v62 }
 0x654   :  { %3285 = vmatpush3.bf16.msra.mxu1 %v3553_v35  ;;  %v3559_v35 = vld [vmem:[%s4532_s15 + $0x20] sm:$0xff]  }
 0x655   :  { %v3211_v1 = vpop.f32.mrf.mxu0  ;;  %3286 = vmatprep.subr.bf16.mxu1 %v3555_v36 }
 0x656   :  { %v1410_v4 = vpack.c.bf16 %v3211_v1, %v3210_v63 }
 0x657   :  { %v1363_v2 = vpop.f32.mrf.mxu0 }
 0x658   :  { %v1409_v3 = vpack.c.bf16 %v1363_v2, %v1360_v0  ;;  %3287 = vmatpush3.bf16.msra.mxu1 %v3555_v36  ;;  %v3558_v2 = vld [vmem:[%s4534_s17 + $0x18] sm:$0xff]  }
 0x659   :  { %v3214_v5 = vpop.f32.mrf.mxu0  ;;  %3288 = vmatprep.subr.bf16.mxu1 %v3557_v37  ;;  %v3561_v36 = vld [vmem:[%s4532_s15 + $0x18] sm:$0xff]  }
 0x65a   :  { %3240 = vmatprep.mubr.bf16.mxu1 %v1409_v3 }
 0x65b   :  { %v1376_v6 = vpop.f32.mrf.mxu0  ;;  %3241 = vmatmul.mubr.bf16.gmra.mxu1 %v1410_v4 }
 0x65c   :  { %3289 = vmatpush3.bf16.msra.mxu1 %v3557_v37  ;;  %v3560_v37 = vld [vmem:[%s4534_s17 + $0x10] sm:$0xff]  }
 0x65d   :  { %v3215_v7 = vpop.f32.mrf.mxu0  ;;  %3290 = vmatprep.subr.bf16.mxu1 %v3559_v35 }
 0x65e   :  { %v1412_v10 = vpack.c.bf16 %v3215_v7, %v3214_v5 }
 0x65f   :  { %v1379_v8 = vpop.f32.mrf.mxu0 }
 0x660   :  { %v1411_v9 = vpack.c.bf16 %v1379_v8, %v1376_v6  ;;  %3291 = vmatpush3.bf16.msra.mxu1 %v3559_v35 }
 0x661   :  { %v3218_v11 = vpop.f32.mrf.mxu0  ;;  %3292 = vmatprep.subr.bf16.mxu1 %v3561_v36 }
 0x662   :  { %3244 = vmatprep.mubr.bf16.mxu1 %v1411_v9 }
 0x663   :  { %v1392_v12 = vpop.f32.mrf.mxu0  ;;  %3245 = vmatmul.mubr.bf16.gmra.mxu1 %v1412_v10 }
 0x664   :  { %3293 = vmatpush3.bf16.msra.mxu1 %v3561_v36 }
 0x665   :  { %v3219_v44 = vpop.f32.mrf.mxu0 }
 0x666   :  { %v1414_v15 = vpack.c.bf16 %v3219_v44, %v3218_v11 }
 0x667   :  { %v1395_v13 = vpop.f32.mrf.mxu0 }
 0x668   :  { %v1413_v14 = vpack.c.bf16 %v1395_v13, %v1392_v12 }
 0x66a   :  { %3248 = vmatprep.mubr.bf16.mxu1 %v1413_v14 }
 0x66b   :  { %3249 = vmatmul.mubr.bf16.gmra.mxu1 %v1414_v15 }
 0x713   :  { %v3238_v16 = vpop.f32.mrf.mxu1 }
 0x714   :  { %v1529_v22 = vadd.f32 %v3238_v16, %v4204_v18  ;;  %v3563_v16 = vld [vmem:[%s4532_s15 + $0x10] sm:$0xff]  }
 0x715   :  { %v1520_v17 = vpop.f32.mrf.mxu1  ;;  %3294 = vmatprep.subr.bf16.mxu1 %v3563_v16 }
 0x716   :  { %v1521_v20 = vadd.f32 %v4204_v18, %v1520_v17  ;;  %v1585_v31 = vmax.f32 %v1529_v22, 0.0  ;;  %3295 = vmatpush3.bf16.msra.mxu1 %v3563_v16  ;;  %v3562_v17 = vld [vmem:[%s4534_s17 + $0x8] sm:$0xff]  }
 0x717   :  { %v3239_v19 = vpop.f32.mrf.mxu1 }
 0x718   :  { %v1532_v21 = vadd.f32 %v3239_v19, %v4204_v18  ;;  %v1583_v28 = vmax.f32 %v1521_v20, 0.0  ;;  %v3564_v19 = vld [vmem:[%s4534_s17] sm:$0xff]  }
 0x719   :  { %v1523_v23 = vpop.f32.mrf.mxu1  ;;  %v3566_v20 = vld [vmem:[%s4532_s15] sm:$0xff]  }
 0x71a   :  { %v1524_v24 = vadd.f32 %v4204_v18, %v1523_v23  ;;  %v1586_v26 = vmax.f32 %v1532_v21, 0.0  ;;  %v3718_v21 = vmov 0.0  }
 0x71b   :  { %v3242_v27 = vpop.f32.mrf.mxu1 }
 0x71c   :  { %v1584_v29 = vmax.f32 %v1524_v24, 0.0  ;;  %v1600_v25 = vpack.c.bf16 %v1586_v26, %v1585_v31  ;;  %v1545_v45 = vadd.f32 %v3242_v27, %v4204_v18  ;;  %v2740_v24 = vld [vmem:[%s4531_s14] ss:$0 sm:$0xff] }
 0x71d   :  { %v1536_v38 = vpop.f32.mrf.mxu1 }
 0x71e   :  { %v1599_v39 = vpack.c.bf16 %v1584_v29, %v1583_v28  ;;  %v1537_v42 = vadd.f32 %v4204_v18, %v1536_v38  ;;  %v1589_v53 = vmax.f32 %v1545_v45, 0.0 }
 0x71f   :  { %v3243_v40 = vpop.f32.mrf.mxu1 }
 0x720   :  { %v1548_v43 = vadd.f32 %v3243_v40, %v4204_v18  ;;  %3268 = vmatprep.mubr.bf16.mxu0 %v1599_v39  ;;  %v1587_v51 = vmax.f32 %v1537_v42, 0.0 }
 0x721   :  { %v1539_v46 = vpop.f32.mrf.mxu1  ;;  %3269 = vmatmul.mubr.bf16.vlgmr.msra.gmra.mxu0 %v1600_v25 }
 0x722   :  { %v1540_v47 = vadd.f32 %v4204_v18, %v1539_v46  ;;  %3317 = vmatpush3.bf16.msra.mxu0 %v3551_v34  ;;  %v1590_v48 = vmax.f32 %v1548_v43, 0.0 }
 0x723   :  { %v3246_v49 = vpop.f32.mrf.mxu1  ;;  %3318 = vmatprep.subr.bf16.mxu0 %v3552_v41 }
 0x724   :  { %v1588_v52 = vmax.f32 %v1540_v47, 0.0  ;;  %v1602_v56 = vpack.c.bf16 %v1590_v48, %v1589_v53  ;;  %v1561_v61 = vadd.f32 %v3246_v49, %v4204_v18 }
 0x725   :  { %v1552_v54 = vpop.f32.mrf.mxu1 }
 0x726   :  { %v1601_v55 = vpack.c.bf16 %v1588_v52, %v1587_v51  ;;  %3319 = vmatpush3.bf16.msra.mxu0 %v3552_v41  ;;  %v1553_v59 = vadd.f32 %v4204_v18, %v1552_v54  ;;  %v1593_v5 = vmax.f32 %v1561_v61, 0.0 }
 0x727   :  { %v3247_v57 = vpop.f32.mrf.mxu1  ;;  %3320 = vmatprep.subr.bf16.mxu0 %v3554_v50 }
 0x728   :  { %v1564_v60 = vadd.f32 %v3247_v57, %v4204_v18  ;;  %3272 = vmatprep.mubr.bf16.mxu0 %v1601_v55  ;;  %v1591_v3 = vmax.f32 %v1553_v59, 0.0 }
 0x729   :  { %v1555_v62 = vpop.f32.mrf.mxu1  ;;  %3273 = vmatmul.mubr.bf16.gmra.mxu0 %v1602_v56 }
 0x72a   :  { %v1556_v63 = vadd.f32 %v4204_v18, %v1555_v62  ;;  %3321 = vmatpush3.bf16.msra.mxu0 %v3554_v50  ;;  %v1594_v0 = vmax.f32 %v1564_v60, 0.0 }
 0x72b   :  { %v3250_v1 = vpop.f32.mrf.mxu1  ;;  %3322 = vmatprep.subr.bf16.mxu0 %v3556_v58 }
 0x72c   :  { %v1592_v4 = vmax.f32 %v1556_v63, 0.0  ;;  %v1604_v8 = vpack.c.bf16 %v1594_v0, %v1593_v5  ;;  %v1577_v12 = vadd.f32 %v3250_v1, %v4204_v18 }
 0x72d   :  { %v1568_v6 = vpop.f32.mrf.mxu1 }
 0x72e   :  { %v1603_v7 = vpack.c.bf16 %v1592_v4, %v1591_v3  ;;  %3323 = vmatpush3.bf16.msra.mxu0 %v3556_v58  ;;  %v1569_v10 = vadd.f32 %v4204_v18, %v1568_v6  ;;  %v1597_v32 = vmax.f32 %v1577_v12, 0.0 }
 0x72f   :  { %v3251_v9 = vpop.f32.mrf.mxu1  ;;  %3324 = vmatprep.subr.bf16.mxu0 %v3558_v2 }
 0x730   :  { %v1580_v11 = vadd.f32 %v3251_v9, %v4204_v18  ;;  %3276 = vmatprep.mubr.bf16.mxu0 %v1603_v7  ;;  %v1595_v15 = vmax.f32 %v1569_v10, 0.0 }
 0x731   :  { %v1571_v44 = vpop.f32.mrf.mxu1  ;;  %3277 = vmatmul.mubr.bf16.gmra.mxu0 %v1604_v8 }
 0x732   :  { %v1572_v13 = vadd.f32 %v4204_v18, %v1571_v44  ;;  %3325 = vmatpush3.bf16.msra.mxu0 %v3558_v2  ;;  %v1598_v14 = vmax.f32 %v1580_v11, 0.0  ;;  %v3565_v18 = vld [vmem:[%s4532_s15 + $0x8] sm:$0xff]  }
 0x733   :  { %3326 = vmatprep.subr.bf16.mxu0 %v3560_v37  ;;  %3296 = vmatprep.subr.bf16.mxu1 %v3565_v18 }
 0x734   :  { %v1596_v30 = vmax.f32 %v1572_v13, 0.0  ;;  %v1606_v34 = vpack.c.bf16 %v1598_v14, %v1597_v32  ;;  %3297 = vmatpush3.bf16.msra.mxu1 %v3565_v18 }
 0x735   :  { %3298 = vmatprep.subr.bf16.mxu1 %v3566_v20 }
 0x736   :  { %v1605_v33 = vpack.c.bf16 %v1596_v30, %v1595_v15  ;;  %3327 = vmatpush3.bf16.msra.mxu0 %v3560_v37  ;;  %v4326_v37 = vld [vmem:[%s4535_s18] ss:$0 sm:$0xff] }
 0x737   :  { %3328 = vmatprep.subr.bf16.mxu0 %v3562_v17 }
 0x738   :  { %3280 = vmatprep.mubr.bf16.mxu0 %v1605_v33  ;;  %3299 = vmatpush3.bf16.msra.mxu1 %v3566_v20 }
 0x739   :  { %3281 = vmatmul.mubr.bf16.gmra.mxu0 %v1606_v34  ;;  %3348 = vmatprep.subr.mxu1 %v3718_v21 }
 0x73a   :  { %3329 = vmatpush3.bf16.msra.mxu0 %v3562_v17 }
 0x73b   :  { %3330 = vmatprep.subr.bf16.mxu0 %v3564_v19 }
 0x73e   :  { %3331 = vmatpush3.bf16.msra.mxu0 %v3564_v19 }
 0x73f   :  { %3383 = vmatprep.subr.mxu0 %v3718_v21 }
 0x7e1   :  { %v3270_v22 = vpop.f32.mrf.mxu0 }
 0x7e2   :  { %v4267_v29 = vadd.f32 %v3270_v22, %v2740_v24 }
 0x7e3   :  { %v1712_v23 = vpop.f32.mrf.mxu0 }
 0x7e4   :  { %v4263_v27 = vadd.f32 %v2740_v24, %v1712_v23  ;;  %v1777_v42 = vmax.f32 %v4267_v29, 0.0 }
 0x7e5   :  { %v3271_v26 = vpop.f32.mrf.mxu0 }
 0x7e6   :  { %v4265_v28 = vadd.f32 %v3271_v26, %v2740_v24  ;;  %v1775_v40 = vmax.f32 %v4263_v27, 0.0 }
 0x7e7   :  { %v1715_v31 = vpop.f32.mrf.mxu0 }
 0x7e8   :  { %v4269_v38 = vadd.f32 %v2740_v24, %v1715_v31  ;;  %v1778_v39 = vmax.f32 %v4265_v28, 0.0 }
 0x7e9   :  { %v3274_v25 = vpop.f32.mrf.mxu0 }
 0x7ea   :  { %v1776_v41 = vmax.f32 %v4269_v38, 0.0  ;;  %v1792_v46 = vpack.c.bf16 %v1778_v39, %v1777_v42  ;;  %v4287_v50 = vadd.f32 %v3274_v25, %v2740_v24  ;;  %v2264_v38 = vld [vmem:[#allocation2] sm:$0x1] }
 0x7eb   :  { %v1728_v43 = vpop.f32.mrf.mxu0  ;;  %2267 = vperm.xlu0 %3462, %v2264_v38  }
 0x7ec   :  { %v1791_v45 = vpack.c.bf16 %v1776_v41, %v1775_v40  ;;  %v4283_v48 = vadd.f32 %v2740_v24, %v1728_v43  ;;  %v1781_v57 = vmax.f32 %v4287_v50, 0.0 }
 0x7ed   :  { %v3275_v47 = vpop.f32.mrf.mxu0 }
 0x7ee   :  { %v4285_v49 = vadd.f32 %v3275_v47, %v2740_v24  ;;  %3332 = vmatprep.mubr.bf16.mxu0 %v1791_v45  ;;  %3300 = vmatprep.mubr.bf16.mxu1 %v1791_v45  ;;  %v1779_v55 = vmax.f32 %v4283_v48, 0.0  ;;  %v4349_v47 = vld [vmem:[%s4533_s16] ss:$0 sm:$0xff] }
 0x7ef   :  { %v1731_v51 = vpop.f32.mrf.mxu0  ;;  %3333 = vmatmul.mubr.bf16.vlgmr.msra.gmra.mxu0 %v1792_v46  ;;  %3301 = vmatmul.mubr.bf16.vlgmr.msra.gmra.mxu1 %v1792_v46 }
 0x7f0   :  { %v4289_v52 = vadd.f32 %v2740_v24, %v1731_v51  ;;  %v1782_v53 = vmax.f32 %v4285_v49, 0.0 }
 0x7f1   :  { %v3278_v54 = vpop.f32.mrf.mxu0 }
 0x7f2   :  { %v1780_v56 = vmax.f32 %v4289_v52, 0.0  ;;  %v1794_v60 = vpack.c.bf16 %v1782_v53, %v1781_v57  ;;  %v1753_v0 = vadd.f32 %v3278_v54, %v2740_v24 }
 0x7f3   :  { %v1744_v58 = vpop.f32.mrf.mxu0 }
 0x7f4   :  { %v1793_v59 = vpack.c.bf16 %v1780_v56, %v1779_v55  ;;  %v1745_v62 = vadd.f32 %v2740_v24, %v1744_v58  ;;  %v1785_v7 = vmax.f32 %v1753_v0, 0.0 }
 0x7f5   :  { %v3279_v61 = vpop.f32.mrf.mxu0 }
 0x7f6   :  { %v1756_v63 = vadd.f32 %v3279_v61, %v2740_v24  ;;  %3336 = vmatprep.mubr.bf16.mxu0 %v1793_v59  ;;  %3304 = vmatprep.mubr.bf16.mxu1 %v1793_v59  ;;  %v1783_v5 = vmax.f32 %v1745_v62, 0.0 }
 0x7f7   :  { %v1747_v1 = vpop.f32.mrf.mxu0  ;;  %3337 = vmatmul.mubr.bf16.gmra.mxu0 %v1794_v60  ;;  %3305 = vmatmul.mubr.bf16.gmra.mxu1 %v1794_v60 }
 0x7f8   :  { %v1748_v2 = vadd.f32 %v2740_v24, %v1747_v1  ;;  %v1786_v3 = vmax.f32 %v1756_v63, 0.0 }
 0x7f9   :  { %v3282_v4 = vpop.f32.mrf.mxu0 }
 0x7fa   :  { %v1784_v6 = vmax.f32 %v1748_v2, 0.0  ;;  %v1796_v10 = vpack.c.bf16 %v1786_v3, %v1785_v7  ;;  %v1769_v12 = vadd.f32 %v3282_v4, %v2740_v24 }
 0x7fb   :  { %v1760_v8 = vpop.f32.mrf.mxu0 }
 0x7fc   :  { %v1795_v9 = vpack.c.bf16 %v1784_v6, %v1783_v5  ;;  %v1761_v44 = vadd.f32 %v2740_v24, %v1760_v8  ;;  %v1789_v32 = vmax.f32 %v1769_v12, 0.0 }
 0x7fd   :  { %v3283_v11 = vpop.f32.mrf.mxu0 }
 0x7fe   :  { %v1772_v13 = vadd.f32 %v3283_v11, %v2740_v24  ;;  %3340 = vmatprep.mubr.bf16.mxu0 %v1795_v9  ;;  %3308 = vmatprep.mubr.bf16.mxu1 %v1795_v9  ;;  %v1787_v33 = vmax.f32 %v1761_v44, 0.0 }
 0x7ff   :  { %v1763_v14 = vpop.f32.mrf.mxu0  ;;  %3341 = vmatmul.mubr.bf16.gmra.mxu0 %v1796_v10  ;;  %3309 = vmatmul.mubr.bf16.gmra.mxu1 %v1796_v10 }
 0x800   :  { %v1790_v15 = vmax.f32 %v1772_v13, 0.0  ;;  %v1764_v30 = vadd.f32 %v2740_v24, %v1763_v14 }
 0x802   :  { %v1788_v34 = vmax.f32 %v1764_v30, 0.0  ;;  %3384 = vmatpush3.msra.mxu0 %v1790_v15  ;;  %v1798_v36 = vpack.c.bf16 %v1790_v15, %v1789_v32 }
 0x803   :  { %3385 = vmatprep.subr.mxu0 %v3718_v21 }
 0x804   :  { %v1797_v35 = vpack.c.bf16 %v1788_v34, %v1787_v33  ;;  %3386 = vmatpush3.msra.mxu0 %v1789_v32 }
 0x805   :  { %3387 = vmatprep.subr.mxu0 %v3718_v21 }
 0x806   :  { %3344 = vmatprep.mubr.bf16.mxu0 %v1797_v35  ;;  %3388 = vmatpush3.msra.mxu0 %v1788_v34 }
 0x807   :  { %3345 = vmatmul.mubr.bf16.gmra.mxu0 %v1798_v36  ;;  %3389 = vmatprep.subr.mxu0 %v3718_v21 }
 0x808   :  { %3390 = vmatpush3.msra.mxu0 %v1787_v33  ;;  %3312 = vmatprep.mubr.bf16.mxu1 %v1797_v35 }
 0x809   :  { %3391 = vmatprep.subr.mxu0 %v3718_v21  ;;  %3313 = vmatmul.mubr.bf16.gmra.mxu1 %v1798_v36 }
 0x80a   :  { %3392 = vmatpush3.msra.mxu0 %v1786_v3  ;;  %3380 = vmatprep.mubr.msk.f32.mxu1 %vm3719_vm0, %v3718_v21 }
 0x80b   :  { %3393 = vmatprep.subr.mxu0 %v3718_v21  ;;  %3415 = vmatprep.mubr.msk.f32.mxu0 %vm3719_vm0, %v3718_v21 }
 0x80c   :  { %3394 = vmatpush3.msra.mxu0 %v1785_v7 }
 0x80d   :  { %3395 = vmatprep.subr.mxu0 %v3718_v21 }
 0x80e   :  { %3396 = vmatpush3.msra.mxu0 %v1784_v6 }
 0x80f   :  { %3397 = vmatprep.subr.mxu0 %v3718_v21 }
 0x810   :  { %3398 = vmatpush3.msra.mxu0 %v1783_v5 }
 0x811   :  { %3399 = vmatprep.subr.mxu0 %v3718_v21 }
 0x812   :  { %3400 = vmatpush3.msra.mxu0 %v1782_v53 }
 0x813   :  { %3401 = vmatprep.subr.mxu0 %v3718_v21 }
 0x814   :  { %3402 = vmatpush3.msra.mxu0 %v1781_v57 }
 0x815   :  { %3403 = vmatprep.subr.mxu0 %v3718_v21 }
 0x816   :  { %3404 = vmatpush3.msra.mxu0 %v1780_v56 }
 0x817   :  { %3405 = vmatprep.subr.mxu0 %v3718_v21 }
 0x818   :  { %3406 = vmatpush3.msra.mxu0 %v1779_v55 }
 0x819   :  { %3407 = vmatprep.subr.mxu0 %v3718_v21 }
 0x81a   :  { %3408 = vmatpush3.msra.mxu0 %v1778_v39 }
 0x81b   :  { %3409 = vmatprep.subr.mxu0 %v3718_v21 }
 0x81c   :  { %3410 = vmatpush3.msra.mxu0 %v1777_v42 }
 0x81d   :  { %3411 = vmatprep.subr.mxu0 %v3718_v21 }
 0x81e   :  { %3412 = vmatpush3.msra.mxu0 %v1776_v41 }
 0x81f   :  { %3413 = vmatprep.subr.mxu0 %v3718_v21 }
 0x820   :  { %3414 = vmatpush3.msra.mxu0 %v1775_v40 }
 0x821   :  { %3418 = vmatprep.subr.bf16.mxu0 %v3718_v21 }
 0x8af   :  { %v3334_v16 = vpop.f32.mrf.mxu0  ;;  %v3302_v17 = vpop.f32.mrf.mxu1 }
 0x8b0   :  { %v2097_v18 = vadd.f32 %v3334_v16, %v4326_v37  ;;  %v1913_v50 = vadd.f32 %v3302_v17, %v4349_v47 }
 0x8b1   :  { %v2088_v19 = vpop.f32.mrf.mxu0  ;;  %v1904_v20 = vpop.f32.mrf.mxu1 }
 0x8b2   :  { %v2769_v22 = vmul.f32 -1.442695, %v2097_v18  ;;  %v2089_v23 = vadd.f32 %v4326_v37, %v2088_v19  ;;  %v1905_v53 = vadd.f32 %v4349_v47, %v1904_v20 }
 0x8b3   :  { %v3335_v24 = vpop.f32.mrf.mxu0  ;;  %v3303_v26 = vpop.f32.mrf.mxu1 }
 0x8b4   :  { %3583 = vpow2.f32 %v2769_v22  ;;  %v2767_v27 = vmul.f32 -1.442695, %v2089_v23  ;;  %v2100_v28 = vadd.f32 %v3335_v24, %v4326_v37  ;;  %v1916_v58 = vadd.f32 %v3303_v26, %v4349_v47 }
 0x8b5   :  { %v2091_v29 = vpop.f32.mrf.mxu0  ;;  %v1907_v31 = vpop.f32.mrf.mxu1 }
 0x8b6   :  { %3585 = vpow2.f32 %v2767_v27  ;;  %v2770_v39 = vmul.f32 -1.442695, %v2100_v28  ;;  %v2092_v25 = vadd.f32 %v4326_v37, %v2091_v29  ;;  %v1908_v62 = vadd.f32 %v4349_v47, %v1907_v31 }
 0x8b7   :  { %v4336_v40 = vpop.f32.mrf.mxu0  ;;  %v4338_v41 = vpop.f32.mrf.mxu1 }
 0x8b8   :  { %3587 = vpow2.f32 %v2770_v39  ;;  %v2768_v42 = vmul.f32 -1.442695, %v2092_v25 }
 0x8b9   :  { %v4340_v43 = vpop.f32.mrf.mxu0  ;;  %v4342_v45 = vpop.f32.mrf.mxu1 }
 0x8ba   :  { %3589 = vpow2.f32 %v2768_v42 }
 0x8bb   :  { %v4344_v46 = vpop.f32.mrf.mxu0  ;;  %v4353_v49 = vpop.f32.mrf.mxu1  ;;  %3591 = vtanh.f32 %v1913_v50 }
 0x8bd   :  { %v4351_v48 = vpop.f32.mrf.mxu0  ;;  %v4359_v56 = vpop.f32.mrf.mxu1 }
 0x8bf   :  { %v3342_v51 = vpop.f32.mrf.mxu0  ;;  %v4363_v1 = vpop.f32.mrf.mxu1 }
 0x8c0   :  { %v2129_v29 = vadd.f32 %v3342_v51, %v4326_v37 }
 0x8c1   :  { %v3584_v52 = vpop.eup %3583  ;;  %v4357_v54 = vpop.f32.mrf.mxu0 }
 0x8c2   :  { %v2201_v55 = vadd.f32 1.0, %v3584_v52  ;;  %v4365_v6 = vpop.f32.mrf.mxu1  ;;  %v2777_v25 = vmul.f32 -1.442695, %v2129_v29 }
 0x8c3   :  { %v3586_v57 = vpop.eup %3585  ;;  %v3343_v59 = vpop.f32.mrf.mxu0 }
 0x8c4   :  { %3593 = vrcp.f32 %v2201_v55  ;;  %v2199_v60 = vadd.f32 1.0, %v3586_v57  ;;  %v4368_v9 = vpop.f32.mrf.mxu1  ;;  %v2132_v24 = vadd.f32 %v3343_v59, %v4326_v37 }
 0x8c5   :  { %v3588_v61 = vpop.eup %3587  ;;  %3595 = vtanh.f32 %v1905_v53  ;;  %v2123_v63 = vpop.f32.mrf.mxu0  ;;  %v2121_v53 = vadd.f32 %v4326_v37, %v4357_v54 }
 0x8c6   :  { %3597 = vrcp.f32 %v2199_v60  ;;  %v2202_v0 = vadd.f32 1.0, %v3588_v61  ;;  %v4371_v15 = vpop.f32.mrf.mxu1  ;;  %v2778_v31 = vmul.f32 -1.442695, %v2132_v24  ;;  %v2124_v39 = vadd.f32 %v4326_v37, %v2123_v63 }
 0x8c7   :  { %v3590_v2 = vpop.eup %3589  ;;  %3599 = vtanh.f32 %v1916_v58  ;;  %v3346_v3 = vpop.f32.mrf.mxu0  ;;  %v2116_v60 = vadd.f32 %v4344_v46, %v4326_v37  ;;  %v2775_v61 = vmul.f32 -1.442695, %v2121_v53 }
 0x8c8   :  { %3601 = vrcp.f32 %v2202_v0  ;;  %v2200_v4 = vadd.f32 1.0, %v3590_v2  ;;  %v2145_v8 = vadd.f32 %v3346_v3, %v4326_v37  ;;  %v3592_v12 = vpop.eup %3591  ;;  %v2776_v55 = vmul.f32 -1.442695, %v2124_v39 }
 0x8c9   :  { %3603 = vtanh.f32 %v1908_v62  ;;  %v2136_v5 = vpop.f32.mrf.mxu0  ;;  %v3314_v19 = vpop.f32.mrf.mxu1  ;;  %v2113_v2 = vadd.f32 %v4336_v40, %v4326_v37  ;;  %v2774_v3 = vmul.f32 -1.442695, %v2116_v60  ;;  %v1948_v40 = vadd.f32 %v4368_v9, %v4349_v47 }
 0x8ca   :  { %3605 = vrcp.f32 %v2200_v4  ;;  %v2781_v44 = vmul.f32 -1.442695, %v2145_v8  ;;  %v2137_v36 = vadd.f32 %v4326_v37, %v2136_v5  ;;  %v1961_v51 = vadd.f32 %v3314_v19, %v4349_v47 }
 0x8cb   :  { %v3347_v7 = vpop.f32.mrf.mxu0  ;;  %v1952_v28 = vpop.f32.mrf.mxu1  ;;  %v2773_v46 = vmul.f32 -1.442695, %v2113_v2  ;;  %v2108_v8 = vadd.f32 %v4326_v37, %v4351_v48  ;;  %v1945_v48 = vadd.f32 %v4363_v1, %v4349_v47  ;;  %v1940_v19 = vadd.f32 %v4349_v47, %v4371_v15 }
 0x8cc   :  { %v2148_v10 = vadd.f32 %v3347_v7, %v4326_v37  ;;  %3607 = vpow2.f32 %v2781_v44  ;;  %v2779_v26 = vmul.f32 -1.442695, %v2137_v36  ;;  %v1953_v7 = vadd.f32 %v4349_v47, %v1952_v28 }
 0x8cd   :  { %v2139_v11 = vpop.f32.mrf.mxu0  ;;  %v3315_v38 = vpop.f32.mrf.mxu1  ;;  %v1937_v28 = vadd.f32 %v4349_v47, %v4365_v6  ;;  %v1924_v60 = vadd.f32 %v4349_v47, %v4359_v56 }
 0x8ce   :  { %v2782_v30 = vmul.f32 -1.442695, %v2148_v10  ;;  %v2140_v32 = vadd.f32 %v4326_v37, %v2139_v11  ;;  %v1964_v50 = vadd.f32 %v3315_v38, %v4349_v47 }
 0x8cf   :  { %v1955_v62 = vpop.f32.mrf.mxu1 }
 0x8d0   :  { %3609 = vpow2.f32 %v2782_v30  ;;  %v2780_v20 = vmul.f32 -1.442695, %v2140_v32  ;;  %v1956_v54 = vadd.f32 %v4349_v47, %v1955_v62 }
 0x8d1   :  { %v3594_v13 = vpop.eup %3593 }
 0x8d2   :  { %v3596_v14 = vpop.eup %3595  ;;  %v4374_v33 = vmul.f32 %v3594_v13, %v3592_v12  ;;  %3611 = vpow2.f32 %v2780_v20  ;;  %v2105_v13 = vadd.f32 %v4326_v37, %v4340_v43 }
 0x8d3   :  { %v3598_v34 = vpop.eup %3597  ;;  %3613 = vpow2.f32 %v2779_v26 }
 0x8d4   :  { %v3600_v35 = vpop.eup %3599  ;;  %v4377_v16 = vmul.f32 %v3598_v34, %v3596_v14  ;;  %3615 = vpow2.f32 %v2778_v31  ;;  %v2772_v14 = vmul.f32 -1.442695, %v2108_v8 }
 0x8d5   :  { %v3602_v17 = vpop.eup %3601  ;;  %3617 = vpow2.f32 %v2777_v25  ;;  %v1932_v25 = vadd.f32 %v4353_v49, %v4349_v47 }
 0x8d6   :  { %v3604_v18 = vpop.eup %3603  ;;  %v4379_v22 = vmul.f32 %v3602_v17, %v3600_v35  ;;  %3619 = vtanh.f32 %v1964_v50  ;;  %v2771_v17 = vmul.f32 -1.442695, %v2105_v13  ;;  %v2268_v13 = vpop.permute.xlu0 %2267 }
 0x8d7   :  { %v3606_v23 = vpop.eup %3605 }
 0x8d8   :  { %v4382_v27 = vmul.f32 %v3606_v23, %v3604_v18 }
 0x8d9   :  { %v3608_v42 = vpop.eup %3607 }
 0x8da   :  { %v2213_v57 = vadd.f32 1.0, %v3608_v42 }
 0x8dd   :  { %v3610_v52 = vpop.eup %3609 }
 0x8de   :  { %v2214_v58 = vadd.f32 1.0, %v3610_v52 }
 0x8df   :  { %v3612_v59 = vpop.eup %3611 }
 0x8e0   :  { %3621 = vrcp.f32 %v2214_v58  ;;  %v2212_v63 = vadd.f32 1.0, %v3612_v59  ;;  %v3614_v0 = vpop.eup %3613 }
 0x8e1   :  { %3623 = vpow2.f32 %v2776_v55  ;;  %v2211_v4 = vadd.f32 1.0, %v3614_v0  ;;  %v3616_v5 = vpop.eup %3615  ;;  %v1929_v55 = vadd.f32 %v4338_v41, %v4349_v47  ;;  %v1921_v0 = vadd.f32 %v4349_v47, %v4342_v45 }
 0x8e2   :  { %3625 = vrcp.f32 %v2213_v57  ;;  %v2210_v10 = vadd.f32 1.0, %v3616_v5  ;;  %v3618_v11 = vpop.eup %3617 }
 0x8e3   :  { %3627 = vtanh.f32 %v1961_v51  ;;  %v3620_v12 = vpop.eup %3619  ;;  %v2209_v32 = vadd.f32 1.0, %v3618_v11 }
 0x8e4   :  { %3629 = vpow2.f32 %v2775_v61 }
 0x8e5   :  { %3631 = vrcp.f32 %v2212_v63 }
 0x8e6   :  { %3633 = vtanh.f32 %v1956_v54 }
 0x8e7   :  { %3635 = vpow2.f32 %v2774_v3 }
 0x8e8   :  { %3637 = vrcp.f32 %v2211_v4 }
 0x8e9   :  { %3639 = vtanh.f32 %v1953_v7 }
 0x8ea   :  { %3641 = vpow2.f32 %v2773_v46 }
 0x8eb   :  { %3643 = vrcp.f32 %v2210_v10 }
 0x8ec   :  { %3645 = vtanh.f32 %v1948_v40  ;;  %v2263_v40 = vld [vmem:[%s4536_s19] sm:$0x1] }
 0x8ed   :  { %v3622_v44 = vpop.eup %3621  ;;  %3647 = vpow2.f32 %v2772_v14 }
 0x8ee   :  { %v3624_v30 = vpop.eup %3623  ;;  %v2262_v34 = vmul.f32 %v3622_v44, %v3620_v12  ;;  %3649 = vrcp.f32 %v2209_v32 }
 0x8ef   :  { %v3626_v35 = vpop.eup %3625  ;;  %v2208_v18 = vadd.f32 1.0, %v3624_v30  ;;  %3651 = vtanh.f32 %v1945_v48 }
 0x8f0   :  { %3349 = vmatpush3.xpose.msra.mxu1 %v2262_v34  ;;  %v3628_v36 = vpop.eup %3627  ;;  %3653 = vpow2.f32 %v2771_v17 }
 0x8f1   :  { %3350 = vmatprep.subr.mxu1 %v3718_v21  ;;  %v3630_v9 = vpop.eup %3629  ;;  %v2261_v37 = vmul.f32 %v3628_v36, %v3626_v35  ;;  %3655 = vrcp.f32 %v2208_v18 }
 0x8f2   :  { %v3632_v43 = vpop.eup %3631  ;;  %v2207_v23 = vadd.f32 1.0, %v3630_v9  ;;  %3657 = vtanh.f32 %v1940_v19  ;;  %v3567_v19 = vld [vmem:[%s4538_s21 + $0x38] sm:$0xff]  }
 0x8f3   :  { %v3634_v20 = vpop.eup %3633 }
 0x8f4   :  { %3351 = vmatpush3.xpose.msra.mxu1 %v2261_v37  ;;  %v3636_v1 = vpop.eup %3635  ;;  %v2260_v24 = vmul.f32 %v3634_v20, %v3632_v43  ;;  %3659 = vrcp.f32 %v2207_v23  ;;  %v3569_v23 = vld [vmem:[%s4538_s21 + $0x28] sm:$0xff]  }
 0x8f5   :  { %3352 = vmatprep.subr.mxu1 %v3718_v21  ;;  %v3638_v26 = vpop.eup %3637  ;;  %v2206_v15 = vadd.f32 1.0, %v3636_v1  ;;  %3661 = vtanh.f32 %v1937_v28  ;;  %v3568_v1 = vld [vmem:[%s4538_s21 + $0x30] sm:$0xff]  }
 0x8f6   :  { %v3640_v29 = vpop.eup %3639  ;;  %v3572_v28 = vld [vmem:[%s4538_s21 + $0x10] sm:$0xff]  }
 0x8f7   :  { %v3642_v31 = vpop.eup %3641  ;;  %v2259_v38 = vmul.f32 %v3640_v29, %v3638_v26  ;;  %3663 = vrcp.f32 %v2206_v15  ;;  %v3571_v26 = vld [vmem:[%s4538_s21 + $0x18] sm:$0xff]   ;;  %v3573_v29 = vld [vmem:[%s4538_s21 + $0x8] sm:$0xff]  }
 0x8f8   :  { %3353 = vmatpush3.xpose.msra.mxu1 %v2260_v24  ;;  %v3644_v39 = vpop.eup %3643  ;;  %v2205_v6 = vadd.f32 1.0, %v3642_v31  ;;  %3665 = vtanh.f32 %v1932_v25  ;;  %v3570_v24 = vld [vmem:[%s4538_s21 + $0x20] sm:$0xff]   ;;  %v3575_v15 = vld [vmem:[%s4540_s23 + $0x38] sm:$0xff]  }
 0x8f9   :  { %3354 = vmatprep.subr.mxu1 %v3718_v21  ;;  %v3646_v42 = vpop.eup %3645  ;;  %v3574_v31 = vld [vmem:[%s4538_s21] sm:$0xff]  }
 0x8fa   :  { %v3648_v50 = vpop.eup %3647  ;;  %v2258_v52 = vmul.f32 %v3646_v42, %v3644_v39  ;;  %3667 = vrcp.f32 %v2205_v6  ;;  %v3577_v39 = vld [vmem:[%s4540_s23 + $0x28] sm:$0xff]   ;;  %v3578_v25 = vld [vmem:[%s4540_s23 + $0x20] sm:$0xff]   ;;  %v3579_v42 = vld [vmem:[%s4540_s23 + $0x18] sm:$0xff]  }
 0x8fb   :  { %v3650_v53 = vpop.eup %3649  ;;  %v2204_v49 = vadd.f32 1.0, %v3648_v50  ;;  %3669 = vtanh.f32 %v1929_v55  ;;  %v3580_v50 = vld [vmem:[%s4540_s23 + $0x10] sm:$0xff]   ;;  %v3581_v55 = vld [vmem:[%s4540_s23 + $0x8] sm:$0xff]  }
 0x8fc   :  { %3355 = vmatpush3.xpose.msra.mxu1 %v2259_v38  ;;  %v3652_v57 = vpop.eup %3651  ;;  %v3576_v38 = vld [vmem:[%s4540_s23 + $0x30] sm:$0xff]  }
 0x8fd   :  { %3356 = vmatprep.subr.mxu1 %v3718_v21  ;;  %v3654_v58 = vpop.eup %3653  ;;  %v2257_v51 = vmul.f32 %v3652_v57, %v3650_v53  ;;  %3671 = vrcp.f32 %v2204_v49  ;;  %v3582_v57 = vld [vmem:[%s4540_s23] sm:$0xff]  }
 0x8fe   :  { %v3656_v59 = vpop.eup %3655  ;;  %v2203_v62 = vadd.f32 1.0, %v3654_v58  ;;  %3673 = vtanh.f32 %v1924_v60  ;;  %v2445_v58 = vld [vmem:[%s4539_s22] sm:$0x1]  ;;  %s3720_s22 = smov [#allocation3]  }
 0x8ff   :  { %v3658_v61 = vpop.eup %3657  ;;  %s2655_s23 = sshll.u32 %s3720_s22, 4  ;;  %s2656_s23 = int_to_ptr.vmem [resolvable:$true] %s2655_s23 }
 0x900   :  { %3357 = vmatpush3.xpose.msra.mxu1 %v2258_v52  ;;  %v2256_v41 = vmul.f32 %v3658_v61, %v3656_v59  ;;  %3675 = vrcp.f32 %v2203_v62  ;;  %s3695_s30 = scalar_lea.vmem %s2656_s23, 16  ;;  %s3699_s11 = scalar_lea.vmem %s2656_s23, 32 }
 0x901   :  { %3358 = vmatprep.subr.mxu1 %v3718_v21  ;;  %v3660_v63 = vpop.eup %3659  ;;  %3677 = vtanh.f32 %v1921_v0  ;;  %p3696_p0 = scmp.ne.s32.totalorder %s2656_s23, %s3695_s30  ;;  %p3700_p1 = scmp.lt.s32.totalorder %s2656_s23, %s2656_s23 }
 0x902   :  { %v3662_v54 = vpop.eup %3661  ;;  %p3701_p2 = scmp.lt.s32.totalorder %s3699_s11, %s3695_s30 }
 0x903   :  { %v2255_v2 = vmul.f32 %v3662_v54, %v3660_v63  ;;  %v2552_v63 = vld [vmem:[%s4541_s24] sm:$0x1] }
 0x904   :  { %3359 = vmatpush3.xpose.msra.mxu1 %v2257_v51  ;;  %v3664_v3 = vpop.eup %3663  ;;  %p3702_p3 = por %p3701_p2, %p3700_p1 }
 0x905   :  { %3360 = vmatprep.subr.mxu1 %v3718_v21  ;;  %v3666_v56 = vpop.eup %3665 }
 0x906   :  { %v2254_v4 = vmul.f32 %v3666_v56, %v3664_v3  ;;  %p3703_p4 = pnand %p3702_p3, %p3696_p0 }
 0x907   :  { %v3668_v5 = vpop.eup %3667 }
 0x908   :  { %3361 = vmatpush3.xpose.msra.mxu1 %v2256_v41  ;;  %v3670_v7 = vpop.eup %3669 }
 0x909   :  { %3362 = vmatprep.subr.mxu1 %v3718_v21  ;;  %v2253_v45 = vmul.f32 %v3670_v7, %v3668_v5 }
 0x90a   :  { %v3672_v47 = vpop.eup %3671 }
 0x90b   :  { %v3674_v46 = vpop.eup %3673 }
 0x90c   :  { %3363 = vmatpush3.xpose.msra.mxu1 %v2255_v2  ;;  %v2252_v8 = vmul.f32 %v3674_v46, %v3672_v47 }
 0x90d   :  { %3364 = vmatprep.subr.mxu1 %v3718_v21  ;;  %v3676_v10 = vpop.eup %3675 }
 0x90e   :  { %v3678_v11 = vpop.eup %3677 }
 0x90f   :  { %v2251_v12 = vmul.f32 %v3678_v11, %v3676_v10 }
 0x910   :  { %3365 = vmatpush3.xpose.msra.mxu1 %v2254_v4 }
 0x911   :  { %3366 = vmatprep.subr.mxu1 %v3718_v21 }
 0x914   :  { %3367 = vmatpush3.xpose.msra.mxu1 %v2253_v45 }
 0x915   :  { %3368 = vmatprep.subr.mxu1 %v3718_v21 }
 0x918   :  { %3369 = vmatpush3.xpose.msra.mxu1 %v2252_v8 }
 0x919   :  { %3370 = vmatprep.subr.mxu1 %v3718_v21 }
 0x91c   :  { %3371 = vmatpush3.xpose.msra.mxu1 %v2251_v12 }
 0x91d   :  { %3372 = vmatprep.subr.mxu1 %v3718_v21 }
 0x920   :  { %3373 = vmatpush3.xpose.msra.mxu1 %v4379_v22  ;;  %v2270_v22 = vlaneseq }
 0x921   :  { %3374 = vmatprep.subr.mxu1 %v3718_v21 }
 0x924   :  { %3375 = vmatpush3.xpose.msra.mxu1 %v4374_v33  ;;  %v2271_v33 = vshrl.u32 %v2270_v22, 7 }
 0x925   :  { %3376 = vmatprep.subr.mxu1 %v3718_v21 }
 0x926   :  { %v2272_v44 = vsub.s32 0, %v2271_v33 }
 0x928   :  { %3377 = vmatpush3.xpose.msra.mxu1 %v4382_v27  ;;  %v2273_v14 = vrot.slane %v2268_v13, %v2272_v44 }
 0x929   :  { %3378 = vmatprep.subr.mxu1 %v3718_v21 }
 0x92c   :  { %3379 = vmatpush3.xpose.msra.mxu1 %v4377_v16  ;;  %v2344_v16 = vld [vmem:[%s4568_s0] sm:$0x1] }
 0x92d   :  { %3438 = vmatprep.subr.bf16.mxu1 %v3718_v21 }
 0x92f   :  { %3381 = vmatmul.mubr.f32.vlgmr.msra.gmra.mxu1 %v2263_v40 }
 0x930   :  { %3454 = vmatprep.mubr.msk.bf16.mxu1 %vm3719_vm0, %v3718_v21  ;;  %3439 = vmatpush3.bf16.msra.mxu1 %v3575_v15 }
 0x931   :  { %3440 = vmatprep.subr.bf16.mxu1 %v3718_v21 }
 0x934   :  { %3441 = vmatpush3.bf16.msra.mxu1 %v3576_v38 }
 0x935   :  { %3442 = vmatprep.subr.bf16.mxu1 %v3718_v21 }
 0x938   :  { %3443 = vmatpush3.bf16.msra.mxu1 %v3577_v39 }
 0x939   :  { %3444 = vmatprep.subr.bf16.mxu1 %v3718_v21 }
 0x93c   :  { %3445 = vmatpush3.bf16.msra.mxu1 %v3578_v25 }
 0x93d   :  { %3446 = vmatprep.subr.bf16.mxu1 %v3718_v21 }
 0x940   :  { %3447 = vmatpush3.bf16.msra.mxu1 %v3579_v42 }
 0x941   :  { %3448 = vmatprep.subr.bf16.mxu1 %v3718_v21 }
 0x944   :  { %3449 = vmatpush3.bf16.msra.mxu1 %v3580_v50 }
 0x945   :  { %3450 = vmatprep.subr.bf16.mxu1 %v3718_v21 }
 0x948   :  { %3451 = vmatpush3.bf16.msra.mxu1 %v3581_v55 }
 0x949   :  { %3452 = vmatprep.subr.bf16.mxu1 %v3718_v21 }
 0x94c   :  { %3453 = vmatpush3.bf16.msra.mxu1 %v3582_v57 }
 0x9ef   :  { %v2340_v27 = vpop.f32.mrf.mxu1 }
 0x9f0   :  { %v2341_v30 = vadd.f32 %v2340_v27, %v2273_v14 }
 0x9f1   :  { %v3382_v32 = vpop.f32.mrf.mxu1 }
 0x9f2   :  { %v2345_v34 = vadd.f32 %v2344_v16, %v2341_v30 }
 0x9f4   :  { %v2347_v35 = vsel %vm2346_vm1, %v2345_v34, -inf }
 0x9f5   :  { %2348 = vmax.xlane.f32.xlu0 %v2347_v35 }
 0xa7e   :  { %v2349_v48 = vpop.xlane.xlu0 %2348 }
 0xa7f   :  { %v2350_v36 = vsub.f32 %v2345_v34, %v2349_v48 }
 0xa81   :  { %v2351_v17 = vmul.f32 1.442695, %v2350_v36 }
 0xa83   :  { %3679 = vpow2.f32 %v2351_v17 }
 0xa90   :  { %v3680_v9 = vpop.eup %3679 }
 0xa91   :  { %v2353_v18 = vsel %vm2346_vm1, %v3680_v9, 0.0 }
 0xa92   :  { %2354 = vadd.xlane.f32.xlu1 %v2353_v18 }
 0xb1b   :  { %v2355_v37 = vpop.xlane.xlu1 %2354 }
 0xb1c   :  { %3681 = vrcp.f32 %v2355_v37 }
 0xb29   :  { %v3682_v43 = vpop.eup %3681 }
 0xb2a   :  { %v2357_v20 = vmul.f32 %v3682_v43, %v3680_v9 }
 0xb2c   :  { %3416 = vmatmul.mubr.f32.vlgmr.msra.gmra.mxu0 %v2357_v20 }
 0xb2d   :  { %3419 = vmatpush3.bf16.msra.mxu0 %v3567_v19  ;;  %3434 = vmatprep.mubr.msk.bf16.mxu0 %vm3719_vm0, %v3718_v21 }
 0xb2e   :  { %3420 = vmatprep.subr.bf16.mxu0 %v3718_v21 }
 0xb31   :  { %3421 = vmatpush3.bf16.msra.mxu0 %v3568_v1 }
 0xb32   :  { %3422 = vmatprep.subr.bf16.mxu0 %v3718_v21 }
 0xb35   :  { %3423 = vmatpush3.bf16.msra.mxu0 %v3569_v23 }
 0xb36   :  { %3424 = vmatprep.subr.bf16.mxu0 %v3718_v21 }
 0xb39   :  { %3425 = vmatpush3.bf16.msra.mxu0 %v3570_v24 }
 0xb3a   :  { %3426 = vmatprep.subr.bf16.mxu0 %v3718_v21 }
 0xb3d   :  { %3427 = vmatpush3.bf16.msra.mxu0 %v3571_v26 }
 0xb3e   :  { %3428 = vmatprep.subr.bf16.mxu0 %v3718_v21 }
 0xb41   :  { %3429 = vmatpush3.bf16.msra.mxu0 %v3572_v28 }
 0xb42   :  { %3430 = vmatprep.subr.bf16.mxu0 %v3718_v21 }
 0xb45   :  { %3431 = vmatpush3.bf16.msra.mxu0 %v3573_v29 }
 0xb46   :  { %3432 = vmatprep.subr.bf16.mxu0 %v3718_v21 }
 0xb49   :  { %3433 = vmatpush3.bf16.msra.mxu0 %v3574_v31 }
 0xbec   :  { %v2424_v6 = vpop.f32.mrf.mxu0 }
 0xbed   :  { %v2428_v52 = vpack.c.bf16 %v2424_v6, %v2424_v6 }
 0xbee   :  { %v3417_v53 = vpop.f32.mrf.mxu0 }
 0xbef   :  { %3435 = vmatmul.mubr.bf16.vlgmr.msra.gmra.mxu0 %v2428_v52 }
 0xcaf   :  { %v2528_v49 = vpop.f32.mrf.mxu0 }
 0xcb0   :  { %v2529_v51 = vadd.f32 %v2528_v49, %v2445_v58 }
 0xcb1   :  { %v3436_v59 = vpop.f32.mrf.mxu0 }
 0xcb2   :  { %v2534_v60 = vmax.f32 %v2529_v51, 0.0 }
 0xcb3   :  { %v2531_v61 = vpop.f32.mrf.mxu0 }
 0xcb4   :  { %v2535_v62 = vpack.c.bf16 %v2534_v60, %v2534_v60 }
 0xcb5   :  { %v3437_v41 = vpop.f32.mrf.mxu0 }
 0xcb6   :  { %3455 = vmatmul.mubr.bf16.vlgmr.msra.gmra.mxu1 %v2535_v62 }
 0xd76   :  { %v2635_v0 = vpop.f32.mrf.mxu1 }
 0xd77   :  { %v2636_v54 = vadd.f32 %v2635_v0, %v2552_v63 }
 0xd78   :  { %v3456_v21 = vpop.f32.mrf.mxu1 }
 0xd79   :  { %v2799_v2 = vmul.f32 -1.442695, %v2636_v54 }
 0xd7a   :  { %v2638_v3 = vpop.f32.mrf.mxu1 }
 0xd7b   :  { %3683 = vpow2.f32 %v2799_v2 }
 0xd7c   :  { %v3457_v56 = vpop.f32.mrf.mxu1 }
 0xd88   :  { %v3684_v4 = vpop.eup %3683 }
 0xd89   :  { %v2644_v5 = vadd.f32 1.0, %v3684_v4 }
 0xd8b   :  { %3685 = vrcp.f32 %v2644_v5 }
 0xd98   :  { %v3686_v7 = vpop.eup %3685 }
 0xd99   :  { %2648 = vst.msk [vmem:[#allocation3] sm:$0x1] %vm2647_vm2, %v3686_v7 }
 0xd9a   :  { %3706 = shalt.err (!%p3703_p4)
}
 0xd9b   :  { %2658 = dma.vmem_to_hbm [thread:$0]  %s2656_s23, 16, %s4542_s25, [#allocation4]  }
 0xd9c   :  { %3715 = dma.done.wait [#allocation4], 16  }
 0xd9d   :  { %3716 = vsyncadd [#allocation4], 4294967280 }
 0xd9e   :  { %2662 = vsyncpa [#allocation4], 1 }

</bundles_post_ra>
